<compile_context>
chip_gen: v7x
topology: tpu7x:2x2x1
jax: 0.10.0
libtpu: 0.0.40
codegen_flags: <defaults>
</compile_context>

<pallas_src>
import math

import jax
import jax.numpy as jnp
from jax.experimental import pallas as pl
from jax.experimental.pallas import tpu as pltpu

LATENT_DIM = 640
TIME_EMB_DIM = 128
HIDDEN = 512
IN_DIM = LATENT_DIM + TIME_EMB_DIM          # 768 = 6 * 128
_HALF = TIME_EMB_DIM // 2
_EMB_SCALE = math.log(10000.0) / (_HALF - 1)


def get_timestep_embedding(timesteps, embedding_dim):
    """Plain-JAX version matching the PyTorch reference (used only for checking)."""
    half_dim = embedding_dim // 2
    emb_scale = math.log(10000.0) / (half_dim - 1)
    emb = jnp.exp(jnp.arange(half_dim, dtype=jnp.float32) * -emb_scale)
    emb = timesteps.astype(jnp.float32)[:, None] * emb[None, :]
    emb = jnp.concatenate([jnp.sin(emb), jnp.cos(emb)], axis=1)
    if embedding_dim % 2 == 1:
        emb = jnp.pad(emb, ((0, 0), (0, 1)))
    return emb


def _mlp_kernel(x_ref, t_ref, w1_ref, b1_ref, w2_ref, b2_ref, w3_ref, b3_ref,
                out_ref):
    # --- fused sinusoidal timestep embedding (EUP/VPU work, hidden under MXU) ---
    # te[:, i]        = sin(t * exp(-scale * i))        for i <  64
    # te[:, i]        = cos(t * exp(-scale * (i-64)))   for i >= 64
    idx = jax.lax.broadcasted_iota(jnp.int32, (1, TIME_EMB_DIM), 1)
    k = jnp.where(idx < _HALF, idx, idx - _HALF).astype(jnp.float32)
    freq = jnp.exp(k * (-_EMB_SCALE))                       # (1, 128)
    arg = t_ref[...] * freq                                 # (TB,1)*(1,128) -> (TB,128)
    te = jnp.where(idx < _HALF, jnp.sin(arg), jnp.cos(arg)).astype(jnp.bfloat16)

    # In-kernel bf16 cast of x + lane-aligned concat (640 is a multiple of 128),
    # so fc1 is one K=768 matmul and the concat never touches HBM.
    h = jnp.concatenate([x_ref[...].astype(jnp.bfloat16), te], axis=-1)   # (TB, 768)

    h1 = jnp.dot(h, w1_ref[...], preferred_element_type=jnp.float32) + b1_ref[...]
    h1 = jnp.maximum(h1, 0.0).astype(jnp.bfloat16)          # f32 epilogue, bf16 MXU operand
    h2 = jnp.dot(h1, w2_ref[...], preferred_element_type=jnp.float32) + b2_ref[...]
    h2 = jnp.maximum(h2, 0.0).astype(jnp.bfloat16)
    out = jnp.dot(h2, w3_ref[...], preferred_element_type=jnp.float32) + b3_ref[...]
    out_ref[...] = out.astype(out_ref.dtype)


def _round_up(n, m):
    return (n + m - 1) // m * m


def _select_tiling(B, tb):
    """Tile-count-first selection: minimal padding, >=2 tiles for v7x when B>64."""
    n_tiles = max(1, -(-B // tb))
    if B > 64:
        n_tiles = max(n_tiles, 2)          # shard across v7x's two TensorCores
    tb_eff = _round_up(-(-B // n_tiles), 16)   # 16-row granule (bf16 sublane packing)
    return n_tiles, tb_eff, n_tiles * tb_eff


def diffusion_mlp_pallas(x, t, w1, b1, w2, b2, w3, b3, *, tb=512,
                         out_dtype=jnp.float32):
    """x: (B, 640) f32, t: (B,) timesteps. w* bf16 (in, out); b* f32 (1, out)."""
    B = x.shape[0]
    x = x.astype(jnp.float32)
    t2d = t.astype(jnp.float32).reshape(B, 1)

    n_tiles, tb_eff, bp = _select_tiling(B, tb)
    if bp != B:
        pad = bp - B
        x = jnp.pad(x, ((0, pad), (0, 0)))
        t2d = jnp.pad(t2d, ((0, pad), (0, 0)))

    out = pl.pallas_call(
        _mlp_kernel,
        out_shape=jax.ShapeDtypeStruct((bp, LATENT_DIM), out_dtype),
        grid_spec=pltpu.PrefetchScalarGridSpec(
            num_scalar_prefetch=0,
            grid=(n_tiles,),
            in_specs=[
                pl.BlockSpec((tb_eff, LATENT_DIM), lambda i: (i, 0)),    # x (f32)
                pl.BlockSpec((tb_eff, 1), lambda i: (i, 0)),             # t (f32)
                # Weights/biases: constant index maps -> resident across grid steps.
                pl.BlockSpec((IN_DIM, HIDDEN), lambda i: (0, 0)),
                pl.BlockSpec((1, HIDDEN), lambda i: (0, 0)),
                pl.BlockSpec((HIDDEN, HIDDEN), lambda i: (0, 0)),
                pl.BlockSpec((1, HIDDEN), lambda i: (0, 0)),
                pl.BlockSpec((HIDDEN, LATENT_DIM), lambda i: (0, 0)),
                pl.BlockSpec((1, LATENT_DIM), lambda i: (0, 0)),
            ],
            out_specs=pl.BlockSpec((tb_eff, LATENT_DIM), lambda i: (i, 0)),
        ),
        compiler_params=pltpu.CompilerParams(
            # Batch axis parallel -> shards tiles across v7x's two TensorCores.
            dimension_semantics=("parallel",),
            # ~10 MiB used at tb=512; 32 MiB budget is safe on v5e/v6e/v7x.
            vmem_limit_bytes=32 * 1024 * 1024,
        ),
    )(x, t2d, w1, b1, w2, b2, w3, b3)

    return out[:B] if bp != B else out


def diffusion_model_forward(params, x, t, *, tb=512):
    """Equivalent of DiffusionModel.forward: x (B, latent_dim), t (B,)."""
    return diffusion_mlp_pallas(
        x, t,
        params["w1"], params["b1"],
        params["w2"], params["b2"],
        params["w3"], params["b3"],
        tb=tb,
    )


def init_params(key):
    """nn.Linear-style U(-1/sqrt(fan_in), +) init.

    Weights stored as (in, out) bf16 (MXU operands); biases (1, out) f32.
    fc1's weight keeps the [x_rows(640); t_emb_rows(128)] ordering so the
    in-kernel concat [x, t_emb] matches the PyTorch cat([x, t_emb], dim=1).
    """
    def linear(key, fan_in, fan_out):
        kw, kb = jax.random.split(key)
        bound = 1.0 / math.sqrt(fan_in)
        w = jax.random.uniform(kw, (fan_in, fan_out), jnp.float32, -bound, bound)
        b = jax.random.uniform(kb, (1, fan_out), jnp.float32, -bound, bound)
        return w.astype(jnp.bfloat16), b

    k1, k2, k3 = jax.random.split(key, 3)
    w1, b1 = linear(k1, IN_DIM, HIDDEN)
    w2, b2 = linear(k2, HIDDEN, HIDDEN)
    w3, b3 = linear(k3, HIDDEN, LATENT_DIM)
    return {"w1": w1, "b1": b1, "w2": w2, "b2": b2, "w3": w3, "b3": b3}


def _reference_forward(params, x, t):
    """Pure-JAX reference with matching precision (bf16 operands, f32 accum).

    Uses the plain get_timestep_embedding + concat path, so it checks the
    kernel's fused embedding and single-dot fc1 end to end.
    """
    t_emb = get_timestep_embedding(t, TIME_EMB_DIM)
    h = jnp.concatenate([x.astype(jnp.float32), t_emb], axis=1).astype(jnp.bfloat16)
    h = jnp.maximum(
        jnp.dot(h, params["w1"], preferred_element_type=jnp.float32) + params["b1"], 0.0
    ).astype(jnp.bfloat16)
    h = jnp.maximum(
        jnp.dot(h, params["w2"], preferred_element_type=jnp.float32) + params["b2"], 0.0
    ).astype(jnp.bfloat16)
    return jnp.dot(h, params["w3"], preferred_element_type=jnp.float32) + params["b3"]


if __name__ == "__main__":
    key = jax.random.PRNGKey(0)
    kp, kx, kt, kx2, kt2, kx3, kt3 = jax.random.split(key, 7)

    params = init_params(kp)
    fwd = jax.jit(diffusion_model_forward)

    # Small batch: single 16-row tile (8 rows padded).
    B = 8
    x = jax.random.normal(kx, (B, LATENT_DIM), jnp.float32)
    t = jax.random.randint(kt, (B,), 0, 1000)
    out = jax.block_until_ready(fwd(params, x, t))
    ref = _reference_forward(params, x, t)
    assert out.shape == (B, LATENT_DIM)
    assert out.dtype == jnp.float32
    assert jnp.allclose(out, ref, atol=2e-2, rtol=2e-2)

    # Non-multiple-of-16 batch: exercises the minimal-padding path.
    B2 = 12
    x2 = jax.random.normal(kx2, (B2, LATENT_DIM), jnp.float32)
    t2 = jax.random.randint(kt2, (B2,), 0, 1000)
    out2 = jax.block_until_ready(fwd(params, x2, t2))
    ref2 = _reference_forward(params, x2, t2)
    assert out2.shape == (B2, LATENT_DIM)
    assert jnp.allclose(out2, ref2, atol=2e-2, rtol=2e-2)

    # Mid-size batch (>64): exercises the forced 2-tile grid (dual-TC on v7x).
    B3 = 96
    x3 = jax.random.normal(kx3, (B3, LATENT_DIM), jnp.float32)
    t3 = jax.random.randint(kt3, (B3,), 0, 1000)
    out3 = jax.block_until_ready(fwd(params, x3, t3))
    ref3 = _reference_forward(params, x3, t3)
    assert out3.shape == (B3, LATENT_DIM)
    assert jnp.allclose(out3, ref3, atol=2e-2, rtol=2e-2)

    print("KERNEL_OK")
</pallas_src>

<mosaic_0001>
module attributes {stable_mosaic.version = 11 : i64} {
  func.func @_mlp_kernel(%arg0: i32, %arg1: memref<16x640xf32, #tpu.memory_space<vmem>>, %arg2: memref<16x1xf32, #tpu.memory_space<vmem>>, %arg3: memref<768x512xbf16, #tpu.memory_space<vmem>>, %arg4: memref<1x512xf32, #tpu.memory_space<vmem>>, %arg5: memref<512x512xbf16, #tpu.memory_space<vmem>>, %arg6: memref<1x512xf32, #tpu.memory_space<vmem>>, %arg7: memref<512x640xbf16, #tpu.memory_space<vmem>>, %arg8: memref<1x640xf32, #tpu.memory_space<vmem>>, %arg9: memref<16x640xf32, #tpu.memory_space<vmem>>) attributes {dimension_semantics = [#tpu.dimension_semantics<parallel>], iteration_bounds = array<i64: 1>, scalar_prefetch = 0 : i64, scratch_operands = 0 : i64, tpu.core_type = #tpu.core_type<tc>, window_params = [{transform_indices = @transform_0, window_bounds = array<i64: 16, 640>}, {transform_indices = @transform_1, window_bounds = array<i64: 16, 1>}, {pipeline_mode = #tpu.pipeline_mode<synchronous>, transform_indices = @transform_2, window_bounds = array<i64: 768, 512>}, {pipeline_mode = #tpu.pipeline_mode<synchronous>, transform_indices = @transform_3, window_bounds = array<i64: 1, 512>}, {pipeline_mode = #tpu.pipeline_mode<synchronous>, transform_indices = @transform_4, window_bounds = array<i64: 512, 512>}, {pipeline_mode = #tpu.pipeline_mode<synchronous>, transform_indices = @transform_5, window_bounds = array<i64: 1, 512>}, {pipeline_mode = #tpu.pipeline_mode<synchronous>, transform_indices = @transform_6, window_bounds = array<i64: 512, 640>}, {pipeline_mode = #tpu.pipeline_mode<synchronous>, transform_indices = @transform_7, window_bounds = array<i64: 1, 640>}, {transform_indices = @transform_8, window_bounds = array<i64: 16, 640>}]} {
    %0 = tpu.iota {dimensions = array<i32: 1>} : vector<1x128xi32>
    %c64_i32 = arith.constant 64 : i32
    %1 = vector.broadcast %c64_i32 : i32 to vector<1x128xi32>
    %2 = arith.cmpi slt, %0, %1 : vector<1x128xi32>
    %c64_i32_0 = arith.constant 64 : i32
    %3 = vector.broadcast %c64_i32_0 : i32 to vector<1x128xi32>
    %4 = arith.subi %0, %3 : vector<1x128xi32>
    %5 = arith.select %2, %0, %4 : vector<1x128xi1>, vector<1x128xi32>
    %6 = arith.sitofp %5 : vector<1x128xi32> to vector<1x128xf32>
    %cst = arith.constant -0.146195874 : f32
    %7 = vector.broadcast %cst : f32 to vector<1x128xf32>
    %8 = arith.mulf %6, %7 : vector<1x128xf32>
    %9 = math.exp %8 : vector<1x128xf32>
    %c0 = arith.constant 0 : index
    %c0_1 = arith.constant 0 : index
    %10 = vector.load %arg2[%c0, %c0_1] : memref<16x1xf32, #tpu.memory_space<vmem>>, vector<16x1xf32>
    %11 = vector.broadcast %10 : vector<16x1xf32> to vector<16x128xf32>
    %12 = vector.broadcast %9 : vector<1x128xf32> to vector<16x128xf32>
    %13 = arith.mulf %11, %12 : vector<16x128xf32>
    %c64_i32_2 = arith.constant 64 : i32
    %14 = vector.broadcast %c64_i32_2 : i32 to vector<1x128xi32>
    %15 = arith.cmpi slt, %0, %14 : vector<1x128xi32>
    %16 = math.sin %13 : vector<16x128xf32>
    %17 = math.cos %13 : vector<16x128xf32>
    %18 = vector.shape_cast %15 : vector<1x128xi1> to vector<1x128xi1>
    %19 = vector.broadcast %18 : vector<1x128xi1> to vector<16x128xi1>
    %20 = arith.select %19, %16, %17 : vector<16x128xi1>, vector<16x128xf32>
    %21 = arith.truncf %20 : vector<16x128xf32> to vector<16x128xbf16>
    %c0_3 = arith.constant 0 : index
    %c0_4 = arith.constant 0 : index
    %22 = vector.load %arg1[%c0_3, %c0_4] : memref<16x640xf32, #tpu.memory_space<vmem>>, vector<16x640xf32>
    %23 = arith.truncf %22 : vector<16x640xf32> to vector<16x640xbf16>
    %24 = tpu.concatenate %23, %21 in 1 : vector<16x640xbf16>, vector<16x128xbf16> -> vector<16x768xbf16>
    %c0_5 = arith.constant 0 : index
    %c0_6 = arith.constant 0 : index
    %25 = vector.load %arg3[%c0_5, %c0_6] : memref<768x512xbf16, #tpu.memory_space<vmem>>, vector<768x512xbf16>
    %cst_7 = arith.constant dense<0.000000e+00> : vector<16x512xf32>
    %26 = tpu.matmul %24, %25, %cst_7 {dimension_numbers = #tpu.dot_dimension_numbers<[1], [0], [0], [1], [0, 0, 1, 1], [], []>} : vector<16x768xbf16>, vector<768x512xbf16>, vector<16x512xf32> -> vector<16x512xf32>
    %c0_8 = arith.constant 0 : index
    %c0_9 = arith.constant 0 : index
    %27 = vector.load %arg4[%c0_8, %c0_9] : memref<1x512xf32, #tpu.memory_space<vmem>>, vector<1x512xf32>
    %28 = vector.broadcast %27 : vector<1x512xf32> to vector<16x512xf32>
    %29 = arith.addf %26, %28 : vector<16x512xf32>
    %cst_10 = arith.constant 0.000000e+00 : f32
    %30 = vector.broadcast %cst_10 : f32 to vector<16x512xf32>
    %31 = arith.maximumf %29, %30 : vector<16x512xf32>
    %32 = arith.truncf %31 : vector<16x512xf32> to vector<16x512xbf16>
    %c0_11 = arith.constant 0 : index
    %c0_12 = arith.constant 0 : index
    %33 = vector.load %arg5[%c0_11, %c0_12] : memref<512x512xbf16, #tpu.memory_space<vmem>>, vector<512x512xbf16>
    %cst_13 = arith.constant dense<0.000000e+00> : vector<16x512xf32>
    %34 = tpu.matmul %32, %33, %cst_13 {dimension_numbers = #tpu.dot_dimension_numbers<[1], [0], [0], [1], [0, 0, 1, 1], [], []>} : vector<16x512xbf16>, vector<512x512xbf16>, vector<16x512xf32> -> vector<16x512xf32>
    %c0_14 = arith.constant 0 : index
    %c0_15 = arith.constant 0 : index
    %35 = vector.load %arg6[%c0_14, %c0_15] : memref<1x512xf32, #tpu.memory_space<vmem>>, vector<1x512xf32>
    %36 = vector.broadcast %35 : vector<1x512xf32> to vector<16x512xf32>
    %37 = arith.addf %34, %36 : vector<16x512xf32>
    %cst_16 = arith.constant 0.000000e+00 : f32
    %38 = vector.broadcast %cst_16 : f32 to vector<16x512xf32>
    %39 = arith.maximumf %37, %38 : vector<16x512xf32>
    %40 = arith.truncf %39 : vector<16x512xf32> to vector<16x512xbf16>
    %c0_17 = arith.constant 0 : index
    %c0_18 = arith.constant 0 : index
    %41 = vector.load %arg7[%c0_17, %c0_18] : memref<512x640xbf16, #tpu.memory_space<vmem>>, vector<512x640xbf16>
    %cst_19 = arith.constant dense<0.000000e+00> : vector<16x640xf32>
    %42 = tpu.matmul %40, %41, %cst_19 {dimension_numbers = #tpu.dot_dimension_numbers<[1], [0], [0], [1], [0, 0, 1, 1], [], []>} : vector<16x512xbf16>, vector<512x640xbf16>, vector<16x640xf32> -> vector<16x640xf32>
    %c0_20 = arith.constant 0 : index
    %c0_21 = arith.constant 0 : index
    %43 = vector.load %arg8[%c0_20, %c0_21] : memref<1x640xf32, #tpu.memory_space<vmem>>, vector<1x640xf32>
    %44 = vector.broadcast %43 : vector<1x640xf32> to vector<16x640xf32>
    %45 = arith.addf %42, %44 : vector<16x640xf32>
    %c0_22 = arith.constant 0 : index
    %c0_23 = arith.constant 0 : index
    %46 = vector.load %arg9[%c0_22, %c0_23] : memref<16x640xf32, #tpu.memory_space<vmem>>, vector<16x640xf32>
    tpu.vector_store %arg9[%c0_22, %c0_23], %45 {strides = array<i32>} : memref<16x640xf32, #tpu.memory_space<vmem>>, vector<16x640xf32>,
    return
  }
  func.func @transform_0(%arg0: i32) -> (i32, i32) {
    %c0_i32 = arith.constant 0 : i32
    %c0_i32_0 = arith.constant 0 : i32
    return %arg0, %c0_i32 : i32, i32
  }
  func.func @transform_1(%arg0: i32) -> (i32, i32) {
    %c0_i32 = arith.constant 0 : i32
    %c0_i32_0 = arith.constant 0 : i32
    return %arg0, %c0_i32 : i32, i32
  }
  func.func @transform_2(%arg0: i32) -> (i32, i32) {
    %c0_i32 = arith.constant 0 : i32
    %c0_i32_0 = arith.constant 0 : i32
    %c0_i32_1 = arith.constant 0 : i32
    return %c0_i32, %c0_i32_0 : i32, i32
  }
  func.func @transform_3(%arg0: i32) -> (i32, i32) {
    %c0_i32 = arith.constant 0 : i32
    %c0_i32_0 = arith.constant 0 : i32
    %c0_i32_1 = arith.constant 0 : i32
    return %c0_i32, %c0_i32_0 : i32, i32
  }
  func.func @transform_4(%arg0: i32) -> (i32, i32) {
    %c0_i32 = arith.constant 0 : i32
    %c0_i32_0 = arith.constant 0 : i32
    %c0_i32_1 = arith.constant 0 : i32
    return %c0_i32, %c0_i32_0 : i32, i32
  }
  func.func @transform_5(%arg0: i32) -> (i32, i32) {
    %c0_i32 = arith.constant 0 : i32
    %c0_i32_0 = arith.constant 0 : i32
    %c0_i32_1 = arith.constant 0 : i32
    return %c0_i32, %c0_i32_0 : i32, i32
  }
  func.func @transform_6(%arg0: i32) -> (i32, i32) {
    %c0_i32 = arith.constant 0 : i32
    %c0_i32_0 = arith.constant 0 : i32
    %c0_i32_1 = arith.constant 0 : i32
    return %c0_i32, %c0_i32_0 : i32, i32
  }
  func.func @transform_7(%arg0: i32) -> (i32, i32) {
    %c0_i32 = arith.constant 0 : i32
    %c0_i32_0 = arith.constant 0 : i32
    %c0_i32_1 = arith.constant 0 : i32
    return %c0_i32, %c0_i32_0 : i32, i32
  }
  func.func @transform_8(%arg0: i32) -> (i32, i32) {
    %c0_i32 = arith.constant 0 : i32
    %c0_i32_0 = arith.constant 0 : i32
    return %arg0, %c0_i32 : i32, i32
  }
}

</mosaic_0001>

<bundles_post_ra>
// kernel: diffusion_model_forward.1
= control target key start
LH: loop header
LB: loop body
LE: loop exit
PB: predicated region body
PF: predicated region fallthrough
CT: control target
= control target key end

     0   :  { %13 = vsyncpa [#allocation3], 0  ;;  %s6074_s0 = inlined_call_operand.vmem [shape: f32[16,640], index: 0, kind: input, shape index: {}]   ;;  %s6075_s1 = inlined_call_operand.vmem [shape: f32[16,1], index: 1, kind: input, shape index: {}]   ;;  %s6076_s2 = inlined_call_operand.hbm [shape: bf16[768,512], index: 2, kind: input, shape index: {}]   ;;  %s6077_s3 = inlined_call_operand.vmem [shape: f32[1,512], index: 3, kind: input, shape index: {}]   ;;  %s6078_s4 = inlined_call_operand.hbm [shape: bf16[512,512], index: 4, kind: input, shape index: {}]   ;;  %s6079_s5 = inlined_call_operand.vmem [shape: f32[1,512], index: 5, kind: input, shape index: {}]   ;;  %s6080_s6 = inlined_call_operand.hbm [shape: bf16[512,640], index: 6, kind: input, shape index: {}]   ;;  %s6081_s7 = inlined_call_operand.vmem [shape: f32[1,640], index: 7, kind: input, shape index: {}]   ;;  %s6082_s8 = inlined_call_operand.vmem [shape: f32[16,640], index: 8, kind: output, shape index: {}]  }
   0x1   :  { %14 = vsyncpa [#allocation5], 0  ;;  %s5671_s27 = smov [#allocation4]   ;;  %s5672_s29 = smov [#allocation2]  }
   0x2   :  { %s38_s28 = sshll.u32 %s5671_s27, 4  ;;  %s24_s30 = sshll.u32 %s5672_s29, 4  ;;  %s39_s28 = int_to_ptr.vmem [resolvable:$true] %s38_s28  ;;  %s5730_s30 = int_to_ptr.vmem [resolvable:$true] %s24_s30 }
   0x3   :  { %s5601_s11 = scalar_lea.hbm %s6078_s4, 16384 }
   0x4   :  { %p5602_p0 = scmp.ne.s32.totalorder %s6078_s4, %s5601_s11  ;;  %p5605_p1 = scmp.lt.u32.totalorder %s5601_s11, %s6078_s4 }
   0x6   :  { %p5607_p2 = pnand %p5605_p1, %p5602_p0 }
   0x8   :  { %5610 = shalt.err (!%p5607_p2)
}
   0x9   :  { %s5611_s16 = scalar_lea.vmem %s39_s28, 16384  ;;  %p5616_p4 = scmp.lt.s32.totalorder %s39_s28, %s39_s28 }
   0xa   :  { %p5612_p3 = scmp.ne.s32.totalorder %s39_s28, %s5611_s16  ;;  %p5617_p5 = scmp.lt.s32.totalorder %s5611_s16, %s5611_s16 }
   0xc   :  { %p5618_p6 = por %p5617_p5, %p5616_p4 }
   0xe   :  { %p5619_p7 = pnand %p5618_p6, %p5612_p3 }
  0x10   :  { %5622 = shalt.err (!%p5619_p7)
}
  0x11   :  { %s5673_s17 = smov 256   ;;  %s5674_s18 = smov 16  }
  0x12   :  { %44 = dma.hbm_to_vmem [thread:$0]  %s6078_s4, 16384, %s39_s28, [#allocation5], %s5673_s17, %s5673_s17, %s5674_s18  }
  0x13   :  { %s5623_s23 = scalar_lea.hbm %s6076_s2, 24576 }
  0x14   :  { %p5624_p8 = scmp.ne.s32.totalorder %s6076_s2, %s5623_s23  ;;  %p5627_p9 = scmp.lt.u32.totalorder %s5623_s23, %s6076_s2 }
  0x16   :  { %p5629_p10 = pnand %p5627_p9, %p5624_p8 }
  0x18   :  { %5632 = shalt.err (!%p5629_p10)
}
  0x19   :  { %s5633_s29 = scalar_lea.vmem %s5730_s30, 24576  ;;  %p5638_p12 = scmp.lt.s32.totalorder %s5730_s30, %s5730_s30 }
  0x1a   :  { %p5634_p11 = scmp.ne.s32.totalorder %s5730_s30, %s5633_s29  ;;  %p5639_p13 = scmp.lt.s32.totalorder %s5633_s29, %s5633_s29 }
  0x1c   :  { %p5640_p0 = por %p5639_p13, %p5638_p12 }
  0x1e   :  { %p5641_p1 = pnand %p5640_p0, %p5634_p11 }
  0x20   :  { %5644 = shalt.err (!%p5641_p1)
}
  0x21   :  { %30 = dma.hbm_to_vmem [thread:$0]  %s6076_s2, 24576, %s5730_s30, [#allocation3], %s5673_s17, %s5673_s17, %s5674_s18  }
  0x22   :  { %s5675_s9 = smov [#allocation6]   ;;  %s5645_s13 = scalar_lea.hbm %s6080_s6, 20480 }
  0x23   :  { %s52_s10 = sshll.u32 %s5675_s9, 4  ;;  %p5646_p2 = scmp.ne.s32.totalorder %s6080_s6, %s5645_s13  ;;  %s53_s10 = int_to_ptr.vmem [resolvable:$true] %s52_s10 }
  0x24   :  { %p5649_p3 = scmp.lt.u32.totalorder %s5645_s13, %s6080_s6 }
  0x26   :  { %p5651_p4 = pnand %p5649_p3, %p5646_p2 }
  0x28   :  { %5654 = shalt.err (!%p5651_p4)
}
  0x29   :  { %s5655_s20 = scalar_lea.vmem %s53_s10, 20480  ;;  %p5660_p6 = scmp.lt.s32.totalorder %s53_s10, %s53_s10 }
  0x2a   :  { %p5656_p5 = scmp.ne.s32.totalorder %s53_s10, %s5655_s20  ;;  %p5661_p7 = scmp.lt.s32.totalorder %s5655_s20, %s5655_s20 }
  0x2c   :  { %p5662_p8 = por %p5661_p7, %p5660_p6 }
  0x2e   :  { %p5663_p9 = pnand %p5662_p8, %p5656_p5 }
  0x30   :  { %5666 = shalt.err (!%p5663_p9)
}
  0x31   :  { %s5676_s2 = smov 320   ;;  %s5677_s30 = smov 20  }
  0x32   :  { %58 = dma.hbm_to_vmem [thread:$0]  %s6080_s6, 20480, %s53_s10, [#allocation5], %s5676_s2, %s5676_s2, %s5677_s30  }
  0x33   :  { %5667 = dma.done.wait [#allocation3], 24576  }
  0x34   :  { %5668 = vsyncadd [#allocation3], 4294942720 }
  0x35   :  { %5669 = dma.done.wait [#allocation5], 36864  }
  0x36   :  { %5670 = vsyncadd [#allocation5], 4294930432  ;;  %v5678_v0 = vmov 0   ;;  %v80_v1 = vld [vmem:[%s6075_s1] sm:$0xff]  ;;  %v81_v2 = vld [vmem:[%s6075_s1 + $0x8] sm:$0xff] }
  0x37   :  { %4886 = vset.pattern.permute.xlu0 %v5678_v0  ;;  %v4887_v3 = vld [vmem:[#allocation2 + $0x4] ss:$16 sps:$4 sm:$0xff]   ;;  %v4889_v4 = vld [vmem:[#allocation2 + $0xc] ss:$16 sps:$4 sm:$0xff]   ;;  %v4891_v5 = vld [vmem:[#allocation2] ss:$16 sps:$4 sm:$0xff]  }
  0x38   :  { %84 = vperm.xlu0 %4886, %v80_v1   ;;  %1702 = vmatprep.subr.bf16.mxu0 %v4887_v3  ;;  %v4892_v6 = vld [vmem:[#allocation2 + $0x8] ss:$16 sps:$4 sm:$0xff]   ;;  %v4893_v7 = vld [vmem:[#allocation2 + $0x24] ss:$16 sps:$4 sm:$0xff]   ;;  %v4895_v8 = vld [vmem:[#allocation2 + $0x2c] ss:$16 sps:$4 sm:$0xff]  }
  0x39   :  { %1831 = vmatprep.subr.bf16.mxu1 %v4889_v4  ;;  %1703 = vmatpush1.bf16.msra.mxu0 %v4891_v5  ;;  %v4897_v9 = vld [vmem:[#allocation2 + $0x20] ss:$16 sps:$4 sm:$0xff]   ;;  %v4898_v10 = vld [vmem:[#allocation2 + $0x28] ss:$16 sps:$4 sm:$0xff]   ;;  %v4899_v11 = vld [vmem:[#allocation2 + $0x44] ss:$16 sps:$4 sm:$0xff]  }
  0x3a   :  { %1832 = vmatpush1.bf16.msra.mxu1 %v4892_v6  ;;  %1704 = vmatprep.subr.bf16.mxu0 %v4893_v7  ;;  %v4901_v12 = vld [vmem:[#allocation2 + $0x4c] ss:$16 sps:$4 sm:$0xff]   ;;  %v4903_v13 = vld [vmem:[#allocation2 + $0x40] ss:$16 sps:$4 sm:$0xff]   ;;  %v4904_v14 = vld [vmem:[#allocation2 + $0x48] ss:$16 sps:$4 sm:$0xff]  }
  0x3b   :  { %1833 = vmatprep.subr.bf16.mxu1 %v4895_v8  ;;  %v4905_v15 = vld [vmem:[#allocation2 + $0x64] ss:$16 sps:$4 sm:$0xff]   ;;  %v4907_v16 = vld [vmem:[#allocation2 + $0x6c] ss:$16 sps:$4 sm:$0xff]   ;;  %v4909_v17 = vld [vmem:[#allocation2 + $0x60] ss:$16 sps:$4 sm:$0xff]  }
  0x3c   :  { %89 = vperm.xlu0 %4886, %v81_v2   ;;  %v4910_v18 = vld [vmem:[#allocation2 + $0x68] ss:$16 sps:$4 sm:$0xff]   ;;  %v4911_v19 = vld [vmem:[#allocation2 + $0x84] ss:$16 sps:$4 sm:$0xff]   ;;  %v4913_v20 = vld [vmem:[#allocation2 + $0x8c] ss:$16 sps:$4 sm:$0xff]  }
  0x3d   :  { %1705 = vmatpush1.bf16.msra.mxu0 %v4897_v9  ;;  %v4915_v21 = vld [vmem:[#allocation2 + $0x80] ss:$16 sps:$4 sm:$0xff]   ;;  %v4916_v22 = vld [vmem:[#allocation2 + $0x88] ss:$16 sps:$4 sm:$0xff]   ;;  %v4917_v23 = vld [vmem:[#allocation2 + $0xa4] ss:$16 sps:$4 sm:$0xff]  }
  0x3e   :  { %1834 = vmatpush1.bf16.msra.mxu1 %v4898_v10  ;;  %1706 = vmatprep.subr.bf16.mxu0 %v4899_v11  ;;  %v4919_v24 = vld [vmem:[#allocation2 + $0xac] ss:$16 sps:$4 sm:$0xff]   ;;  %v4921_v25 = vld [vmem:[#allocation2 + $0xa0] ss:$16 sps:$4 sm:$0xff]   ;;  %v4922_v26 = vld [vmem:[#allocation2 + $0xa8] ss:$16 sps:$4 sm:$0xff]  }
  0x3f   :  { %1835 = vmatprep.subr.bf16.mxu1 %v4901_v12  ;;  %v4923_v27 = vld [vmem:[#allocation2 + $0xc4] ss:$16 sps:$4 sm:$0xff]   ;;  %v4925_v28 = vld [vmem:[#allocation2 + $0xcc] ss:$16 sps:$4 sm:$0xff]   ;;  %v4927_v29 = vld [vmem:[#allocation2 + $0xc0] ss:$16 sps:$4 sm:$0xff]  }
  0x40   :  { %v4928_v30 = vld [vmem:[#allocation2 + $0xc8] ss:$16 sps:$4 sm:$0xff]   ;;  %v4929_v31 = vld [vmem:[#allocation2 + $0xe4] ss:$16 sps:$4 sm:$0xff]   ;;  %v4931_v32 = vld [vmem:[#allocation2 + $0xec] ss:$16 sps:$4 sm:$0xff]  }
  0x41   :  { %1707 = vmatpush1.bf16.msra.mxu0 %v4903_v13  ;;  %v4933_v33 = vld [vmem:[#allocation2 + $0xe0] ss:$16 sps:$4 sm:$0xff]   ;;  %v4934_v34 = vld [vmem:[#allocation2 + $0xe8] ss:$16 sps:$4 sm:$0xff]   ;;  %v4935_v35 = vld [vmem:[#allocation2 + $0x104] ss:$16 sps:$4 sm:$0xff]  }
  0x42   :  { %1836 = vmatpush1.bf16.msra.mxu1 %v4904_v14  ;;  %1708 = vmatprep.subr.bf16.mxu0 %v4905_v15  ;;  %v4937_v36 = vld [vmem:[#allocation2 + $0x10c] ss:$16 sps:$4 sm:$0xff]   ;;  %v4939_v37 = vld [vmem:[#allocation2 + $0x100] ss:$16 sps:$4 sm:$0xff]   ;;  %v4940_v38 = vld [vmem:[#allocation2 + $0x108] ss:$16 sps:$4 sm:$0xff]  }
  0x43   :  { %1837 = vmatprep.subr.bf16.mxu1 %v4907_v16  ;;  %v4941_v39 = vld [vmem:[#allocation2 + $0x124] ss:$16 sps:$4 sm:$0xff]   ;;  %v4943_v40 = vld [vmem:[#allocation2 + $0x12c] ss:$16 sps:$4 sm:$0xff]   ;;  %v4945_v41 = vld [vmem:[#allocation2 + $0x120] ss:$16 sps:$4 sm:$0xff]  }
  0x44   :  { %v4946_v42 = vld [vmem:[#allocation2 + $0x128] ss:$16 sps:$4 sm:$0xff]   ;;  %v4947_v43 = vld [vmem:[#allocation2 + $0x144] ss:$16 sps:$4 sm:$0xff]   ;;  %v4949_v44 = vld [vmem:[#allocation2 + $0x14c] ss:$16 sps:$4 sm:$0xff]  }
  0x45   :  { %1709 = vmatpush1.bf16.msra.mxu0 %v4909_v17  ;;  %v4951_v45 = vld [vmem:[#allocation2 + $0x140] ss:$16 sps:$4 sm:$0xff]   ;;  %v4952_v46 = vld [vmem:[#allocation2 + $0x148] ss:$16 sps:$4 sm:$0xff]   ;;  %v4953_v47 = vld [vmem:[#allocation2 + $0x164] ss:$16 sps:$4 sm:$0xff]  }
  0x46   :  { %1838 = vmatpush1.bf16.msra.mxu1 %v4910_v18  ;;  %1710 = vmatprep.subr.bf16.mxu0 %v4911_v19  ;;  %v4955_v48 = vld [vmem:[#allocation2 + $0x16c] ss:$16 sps:$4 sm:$0xff]   ;;  %v4957_v49 = vld [vmem:[#allocation2 + $0x160] ss:$16 sps:$4 sm:$0xff]   ;;  %v4958_v52 = vld [vmem:[#allocation2 + $0x168] ss:$16 sps:$4 sm:$0xff]  }
  0x47   :  { %1839 = vmatprep.subr.bf16.mxu1 %v4913_v20  ;;  %v514_v50 = vld [vmem:[%s6074_s0 + $0x8] sm:$0xff]  ;;  %v519_v51 = vld [vmem:[%s6074_s0 + $0x30] sm:$0xff]  ;;  %v513_v5 = vld [vmem:[%s6074_s0] sm:$0xff] }
  0x48   :  { %v524_v53 = vpack.c.bf16 %v519_v51, %v514_v50  ;;  %v4959_v54 = vld [vmem:[#allocation2 + $0x184] ss:$16 sps:$4 sm:$0xff]   ;;  %v4961_v55 = vld [vmem:[#allocation2 + $0x18c] ss:$16 sps:$4 sm:$0xff]   ;;  %v4963_v56 = vld [vmem:[#allocation2 + $0x180] ss:$16 sps:$4 sm:$0xff]  }
  0x49   :  { %1711 = vmatpush1.bf16.msra.mxu0 %v4915_v21  ;;  %v4964_v57 = vld [vmem:[#allocation2 + $0x188] ss:$16 sps:$4 sm:$0xff]   ;;  %v4965_v58 = vld [vmem:[#allocation2 + $0x1a4] ss:$16 sps:$4 sm:$0xff]   ;;  %v4967_v59 = vld [vmem:[#allocation2 + $0x1ac] ss:$16 sps:$4 sm:$0xff]  }
  0x4a   :  { %1840 = vmatpush1.bf16.msra.mxu1 %v4916_v22  ;;  %1712 = vmatprep.subr.bf16.mxu0 %v4917_v23  ;;  %v4969_v60 = vld [vmem:[#allocation2 + $0x1a0] ss:$16 sps:$4 sm:$0xff]   ;;  %v4970_v61 = vld [vmem:[#allocation2 + $0x1a8] ss:$16 sps:$4 sm:$0xff]   ;;  %v4971_v62 = vld [vmem:[#allocation2 + $0x1c4] ss:$16 sps:$4 sm:$0xff]  }
  0x4b   :  { %1841 = vmatprep.subr.bf16.mxu1 %v4919_v24  ;;  %1734 = vmatprep.mubr.bf16.mxu0 %v524_v53  ;;  %v4973_v63 = vld [vmem:[#allocation2 + $0x1cc] ss:$16 sps:$4 sm:$0xff]   ;;  %v4975_v0 = vld [vmem:[#allocation2 + $0x1c0] ss:$16 sps:$4 sm:$0xff]   ;;  %v4976_v1 = vld [vmem:[#allocation2 + $0x1c8] ss:$16 sps:$4 sm:$0xff]  }
  0x4c   :  { %1863 = vmatprep.mubr.bf16.mxu1 %v524_v53  ;;  %v4977_v2 = vld [vmem:[#allocation2 + $0x1e4] ss:$16 sps:$4 sm:$0xff]   ;;  %v4979_v3 = vld [vmem:[#allocation2 + $0x1ec] ss:$16 sps:$4 sm:$0xff]   ;;  %v4981_v4 = vld [vmem:[#allocation2 + $0x1e0] ss:$16 sps:$4 sm:$0xff]  }
  0x4d   :  { %1713 = vmatpush1.bf16.msra.mxu0 %v4921_v25  ;;  %v518_v6 = vld [vmem:[%s6074_s0 + $0x28] sm:$0xff]  ;;  %v4985_v8 = vld [vmem:[#allocation2 + $0x204] ss:$16 sps:$4 sm:$0xff]   ;;  %v4983_v11 = vld [vmem:[#allocation2 + $0x200] ss:$16 sps:$4 sm:$0xff]  }
  0x4e   :  { %1842 = vmatpush1.bf16.msra.mxu1 %v4922_v26  ;;  %1714 = vmatprep.subr.bf16.mxu0 %v4923_v27  ;;  %v4982_v7 = vld [vmem:[#allocation2 + $0x1e8] ss:$16 sps:$4 sm:$0xff]   ;;  %v4988_v9 = vld [vmem:[#allocation2 + $0x20c] ss:$16 sps:$4 sm:$0xff]   ;;  %v523_v10 = vpack.c.bf16 %v518_v6, %v513_v5  ;;  %v4991_v13 = vld [vmem:[#allocation2 + $0x224] ss:$16 sps:$4 sm:$0xff]  }
  0x4f   :  { %1843 = vmatprep.subr.bf16.mxu1 %v4925_v28  ;;  %v4986_v12 = vld [vmem:[#allocation2 + $0x208] ss:$16 sps:$4 sm:$0xff]   ;;  %v4994_v14 = vld [vmem:[#allocation2 + $0x22c] ss:$16 sps:$4 sm:$0xff]   ;;  %v4989_v15 = vld [vmem:[#allocation2 + $0x220] ss:$16 sps:$4 sm:$0xff]  }
  0x50   :  { %v4992_v16 = vld [vmem:[#allocation2 + $0x228] ss:$16 sps:$4 sm:$0xff]   ;;  %v4997_v17 = vld [vmem:[#allocation2 + $0x244] ss:$16 sps:$4 sm:$0xff]   ;;  %v5000_v18 = vld [vmem:[#allocation2 + $0x24c] ss:$16 sps:$4 sm:$0xff]  }
  0x51   :  { %1715 = vmatpush1.bf16.msra.mxu0 %v4927_v29  ;;  %v4995_v19 = vld [vmem:[#allocation2 + $0x240] ss:$16 sps:$4 sm:$0xff]   ;;  %v4998_v20 = vld [vmem:[#allocation2 + $0x248] ss:$16 sps:$4 sm:$0xff]   ;;  %v5003_v21 = vld [vmem:[#allocation2 + $0x264] ss:$16 sps:$4 sm:$0xff]  }
  0x52   :  { %1844 = vmatpush1.bf16.msra.mxu1 %v4928_v30  ;;  %1716 = vmatprep.subr.bf16.mxu0 %v4929_v31  ;;  %v5006_v22 = vld [vmem:[#allocation2 + $0x26c] ss:$16 sps:$4 sm:$0xff]   ;;  %v5001_v23 = vld [vmem:[#allocation2 + $0x260] ss:$16 sps:$4 sm:$0xff]   ;;  %v5004_v24 = vld [vmem:[#allocation2 + $0x268] ss:$16 sps:$4 sm:$0xff]  }
  0x53   :  { %1845 = vmatprep.subr.bf16.mxu1 %v4931_v32  ;;  %v5009_v25 = vld [vmem:[#allocation2 + $0x284] ss:$16 sps:$4 sm:$0xff]   ;;  %v5012_v26 = vld [vmem:[#allocation2 + $0x28c] ss:$16 sps:$4 sm:$0xff]   ;;  %v5007_v27 = vld [vmem:[#allocation2 + $0x280] ss:$16 sps:$4 sm:$0xff]  }
  0x54   :  { %v5010_v28 = vld [vmem:[#allocation2 + $0x288] ss:$16 sps:$4 sm:$0xff]   ;;  %v5015_v29 = vld [vmem:[#allocation2 + $0x2a4] ss:$16 sps:$4 sm:$0xff]   ;;  %v5018_v30 = vld [vmem:[#allocation2 + $0x2ac] ss:$16 sps:$4 sm:$0xff]  }
  0x55   :  { %1717 = vmatpush1.bf16.msra.mxu0 %v4933_v33  ;;  %v5013_v31 = vld [vmem:[#allocation2 + $0x2a0] ss:$16 sps:$4 sm:$0xff]   ;;  %v5016_v32 = vld [vmem:[#allocation2 + $0x2a8] ss:$16 sps:$4 sm:$0xff]   ;;  %v5021_v33 = vld [vmem:[#allocation2 + $0x2c4] ss:$16 sps:$4 sm:$0xff]  }
  0x56   :  { %1846 = vmatpush1.bf16.msra.mxu1 %v4934_v34  ;;  %1718 = vmatprep.subr.bf16.mxu0 %v4935_v35  ;;  %v5024_v34 = vld [vmem:[#allocation2 + $0x2cc] ss:$16 sps:$4 sm:$0xff]   ;;  %v5019_v35 = vld [vmem:[#allocation2 + $0x2c0] ss:$16 sps:$4 sm:$0xff]   ;;  %v5039_v50 = vld [vmem:[#allocation2 + $0x324] ss:$16 sps:$4 sm:$0xff]  }
  0x57   :  { %1847 = vmatprep.subr.bf16.mxu1 %v4937_v36  ;;  %v516_v36 = vld [vmem:[%s6074_s0 + $0x18] sm:$0xff]  ;;  %v5037_v53 = vld [vmem:[#allocation2 + $0x320] ss:$16 sps:$4 sm:$0xff]  }
  0x58   :  { %v5055_v5 = vld [vmem:[#allocation2 + $0x380] ss:$16 sps:$4 sm:$0xff]   ;;  %v5058_v6 = vld [vmem:[#allocation2 + $0x388] ss:$16 sps:$4 sm:$0xff]  }
  0x59   :  { %1719 = vmatpush1.bf16.msra.mxu0 %v4939_v37  ;;  %v521_v37 = vld [vmem:[%s6074_s0 + $0x40] sm:$0xff] }
  0x5a   :  { %1848 = vmatpush1.bf16.msra.mxu1 %v4940_v38  ;;  %1720 = vmatprep.subr.bf16.mxu0 %v4941_v39  ;;  %v5022_v38 = vld [vmem:[#allocation2 + $0x2c8] ss:$16 sps:$4 sm:$0xff]   ;;  %v526_v39 = vpack.c.bf16 %v521_v37, %v516_v36 }
  0x5b   :  { %1849 = vmatprep.subr.bf16.mxu1 %v4943_v40  ;;  %v5027_v40 = vld [vmem:[#allocation2 + $0x2e4] ss:$16 sps:$4 sm:$0xff]   ;;  %v5088_v37 = vld [vmem:[#allocation2 + $0x428] ss:$16 sps:$4 sm:$0xff]  }
  0x5d   :  { %1721 = vmatpush1.bf16.msra.mxu0 %v4945_v41  ;;  %v71_v41 = vlaneseq }
  0x5e   :  { %1850 = vmatpush1.bf16.msra.mxu1 %v4946_v42  ;;  %1722 = vmatprep.subr.bf16.mxu0 %v4947_v43  ;;  %v5030_v42 = vld [vmem:[#allocation2 + $0x2ec] ss:$16 sps:$4 sm:$0xff]   ;;  %v5025_v43 = vld [vmem:[#allocation2 + $0x2e0] ss:$16 sps:$4 sm:$0xff]  }
  0x5f   :  { %1851 = vmatprep.subr.bf16.mxu1 %v4949_v44  ;;  %v5028_v44 = vld [vmem:[#allocation2 + $0x2e8] ss:$16 sps:$4 sm:$0xff]  }
  0x61   :  { %1723 = vmatpush1.bf16.msra.mxu0 %v4951_v45  ;;  %v5033_v45 = vld [vmem:[#allocation2 + $0x304] ss:$16 sps:$4 sm:$0xff]  }
  0x62   :  { %1852 = vmatpush1.bf16.msra.mxu1 %v4952_v46  ;;  %1724 = vmatprep.subr.bf16.mxu0 %v4953_v47  ;;  %v5798_v46 = vand.u32 127, %v71_v41  ;;  %v5036_v47 = vld [vmem:[#allocation2 + $0x30c] ss:$16 sps:$4 sm:$0xff]  }
  0x63   :  { %1853 = vmatprep.subr.bf16.mxu1 %v4955_v48  ;;  %v5031_v48 = vld [vmem:[#allocation2 + $0x300] ss:$16 sps:$4 sm:$0xff]  }
  0x64   :  { %v4267_v51 = vadd.s32 4294967232, %v5798_v46  ;;  %vm73_vm0 = vcmp.lt.s32.totalorder %v5798_v46, 64 }
  0x65   :  { %1725 = vmatpush1.bf16.msra.mxu0 %v4957_v49  ;;  %v5034_v49 = vld [vmem:[#allocation2 + $0x308] ss:$16 sps:$4 sm:$0xff]  }
  0x66   :  { %1854 = vmatpush1.bf16.msra.mxu1 %v4958_v52  ;;  %1726 = vmatprep.subr.bf16.mxu0 %v4959_v54  ;;  %v5042_v52 = vld [vmem:[#allocation2 + $0x32c] ss:$16 sps:$4 sm:$0xff]   ;;  %v5040_v54 = vld [vmem:[#allocation2 + $0x328] ss:$16 sps:$4 sm:$0xff]  }
  0x67   :  { %1855 = vmatprep.subr.bf16.mxu1 %v4961_v55  ;;  %v75_v55 = vsel %vm73_vm0, %v5798_v46, %v4267_v51  ;;  %v5195_v46 = vld [vmem:[#allocation4 + $0x64] ss:$16 sps:$4 sm:$0xff]  }
  0x69   :  { %1727 = vmatpush1.bf16.msra.mxu0 %v4963_v56  ;;  %v5045_v56 = vld [vmem:[#allocation2 + $0x344] ss:$16 sps:$4 sm:$0xff]  }
  0x6a   :  { %1856 = vmatpush1.bf16.msra.mxu1 %v4964_v57  ;;  %1728 = vmatprep.subr.bf16.mxu0 %v4965_v58  ;;  %v5048_v57 = vld [vmem:[#allocation2 + $0x34c] ss:$16 sps:$4 sm:$0xff]   ;;  %v76_v58 = vcvt.s32.f32 %v75_v55 }
  0x6b   :  { %1857 = vmatprep.subr.bf16.mxu1 %v4967_v59  ;;  %v5043_v59 = vld [vmem:[#allocation2 + $0x340] ss:$16 sps:$4 sm:$0xff]  }
  0x6d   :  { %1729 = vmatpush1.bf16.msra.mxu0 %v4969_v60  ;;  %v5046_v60 = vld [vmem:[#allocation2 + $0x348] ss:$16 sps:$4 sm:$0xff]  }
  0x6e   :  { %1858 = vmatpush1.bf16.msra.mxu1 %v4970_v61  ;;  %1730 = vmatprep.subr.bf16.mxu0 %v4971_v62  ;;  %v5051_v61 = vld [vmem:[#allocation2 + $0x364] ss:$16 sps:$4 sm:$0xff]   ;;  %v5054_v62 = vld [vmem:[#allocation2 + $0x36c] ss:$16 sps:$4 sm:$0xff]  }
  0x6f   :  { %1859 = vmatprep.subr.bf16.mxu1 %v4973_v63  ;;  %v77_v63 = vmul.f32 -0.14619587, %v76_v58 }
  0x71   :  { %1731 = vmatpush1.bf16.msra.mxu0 %v4975_v0  ;;  %v5049_v0 = vld [vmem:[#allocation2 + $0x360] ss:$16 sps:$4 sm:$0xff]  }
  0x72   :  { %1860 = vmatpush1.bf16.msra.mxu1 %v4976_v1  ;;  %1732 = vmatprep.subr.bf16.mxu0 %v4977_v2  ;;  %v5052_v1 = vld [vmem:[#allocation2 + $0x368] ss:$16 sps:$4 sm:$0xff]   ;;  %v5057_v2 = vld [vmem:[#allocation2 + $0x384] ss:$16 sps:$4 sm:$0xff]  }
  0x73   :  { %1861 = vmatprep.subr.bf16.mxu1 %v4979_v3  ;;  %v5060_v3 = vld [vmem:[#allocation2 + $0x38c] ss:$16 sps:$4 sm:$0xff]  }
  0x75   :  { %1733 = vmatpush1.bf16.msra.mxu0 %v4981_v4  ;;  %v78_v4 = vmul.f32 1.442695, %v77_v63  ;;  %v5108_v63 = vld [vmem:[#allocation2 + $0x48c] ss:$16 sps:$4 sm:$0xff]  }
  0x76   :  { %1862 = vmatpush1.bf16.msra.mxu1 %v4982_v7  ;;  %1745 = vmatprep.subr.bf16.mxu0 %v4985_v8  ;;  %v5063_v7 = vld [vmem:[#allocation2 + $0x3a4] ss:$16 sps:$4 sm:$0xff]   ;;  %v5066_v8 = vld [vmem:[#allocation2 + $0x3ac] ss:$16 sps:$4 sm:$0xff]  }
  0x77   :  { %1874 = vmatprep.subr.bf16.mxu1 %v4988_v9  ;;  %5591 = vpow2.f32 %v78_v4  ;;  %v5061_v9 = vld [vmem:[#allocation2 + $0x3a0] ss:$16 sps:$4 sm:$0xff]  }
  0x78   :  { %1735 = vmatmul.mubr.bf16.vlgmr.msra.gmra.mrb[0].mxu0 %v523_v10 }
  0x79   :  { %1746 = vmatpush1.bf16.msra.mxu0 %v4983_v11  ;;  %1864 = vmatmul.mubr.bf16.vlgmr.msra.gmra.mrb[0].mxu1 %v523_v10  ;;  %v5064_v10 = vld [vmem:[#allocation2 + $0x3a8] ss:$16 sps:$4 sm:$0xff]   ;;  %v5069_v11 = vld [vmem:[#allocation2 + $0x3c4] ss:$16 sps:$4 sm:$0xff]  }
  0x7a   :  { %1875 = vmatpush1.bf16.msra.mxu1 %v4986_v12  ;;  %1747 = vmatprep.subr.bf16.mxu0 %v4991_v13  ;;  %v5072_v12 = vld [vmem:[#allocation2 + $0x3cc] ss:$16 sps:$4 sm:$0xff]   ;;  %v5067_v13 = vld [vmem:[#allocation2 + $0x3c0] ss:$16 sps:$4 sm:$0xff]  }
  0x7b   :  { %1876 = vmatprep.subr.bf16.mxu1 %v4994_v14  ;;  %1777 = vmatprep.mubr.bf16.mxu0 %v526_v39  ;;  %v5070_v14 = vld [vmem:[#allocation2 + $0x3c8] ss:$16 sps:$4 sm:$0xff]  }
  0x7c   :  { %1906 = vmatprep.mubr.bf16.mxu1 %v526_v39 }
  0x7d   :  { %1748 = vmatpush1.bf16.msra.mxu0 %v4989_v15  ;;  %v5075_v15 = vld [vmem:[#allocation2 + $0x3e4] ss:$16 sps:$4 sm:$0xff]  }
  0x7e   :  { %1877 = vmatpush1.bf16.msra.mxu1 %v4992_v16  ;;  %1749 = vmatprep.subr.bf16.mxu0 %v4997_v17  ;;  %v5078_v16 = vld [vmem:[#allocation2 + $0x3ec] ss:$16 sps:$4 sm:$0xff]   ;;  %v5073_v17 = vld [vmem:[#allocation2 + $0x3e0] ss:$16 sps:$4 sm:$0xff]  }
  0x7f   :  { %1878 = vmatprep.subr.bf16.mxu1 %v5000_v18  ;;  %v515_v18 = vld [vmem:[%s6074_s0 + $0x10] sm:$0xff] }
  0x81   :  { %1750 = vmatpush1.bf16.msra.mxu0 %v4995_v19  ;;  %v520_v19 = vld [vmem:[%s6074_s0 + $0x38] sm:$0xff] }
  0x82   :  { %1879 = vmatpush1.bf16.msra.mxu1 %v4998_v20  ;;  %1751 = vmatprep.subr.bf16.mxu0 %v5003_v21  ;;  %v5076_v20 = vld [vmem:[#allocation2 + $0x3e8] ss:$16 sps:$4 sm:$0xff]   ;;  %v5081_v21 = vld [vmem:[#allocation2 + $0x404] ss:$16 sps:$4 sm:$0xff]  }
  0x83   :  { %1880 = vmatprep.subr.bf16.mxu1 %v5006_v22  ;;  %v5592_v22 = vpop.eup %5591 }
  0x85   :  { %1752 = vmatpush1.bf16.msra.mxu0 %v5001_v23  ;;  %v5084_v23 = vld [vmem:[#allocation2 + $0x40c] ss:$16 sps:$4 sm:$0xff]  }
  0x86   :  { %1881 = vmatpush1.bf16.msra.mxu1 %v5004_v24  ;;  %1753 = vmatprep.subr.bf16.mxu0 %v5009_v25  ;;  %v525_v24 = vpack.c.bf16 %v520_v19, %v515_v18 }
  0x87   :  { %1882 = vmatprep.subr.bf16.mxu1 %v5012_v26  ;;  %v5079_v26 = vld [vmem:[#allocation2 + $0x400] ss:$16 sps:$4 sm:$0xff]  }
  0x89   :  { %1754 = vmatpush1.bf16.msra.mxu0 %v5007_v27 }
  0x8a   :  { %1883 = vmatpush1.bf16.msra.mxu1 %v5010_v28  ;;  %1755 = vmatprep.subr.bf16.mxu0 %v5015_v29  ;;  %v5082_v28 = vld [vmem:[#allocation2 + $0x408] ss:$16 sps:$4 sm:$0xff]   ;;  %v5087_v29 = vld [vmem:[#allocation2 + $0x424] ss:$16 sps:$4 sm:$0xff]  }
  0x8b   :  { %1884 = vmatprep.subr.bf16.mxu1 %v5018_v30  ;;  %v5090_v30 = vld [vmem:[#allocation2 + $0x42c] ss:$16 sps:$4 sm:$0xff]  }
  0x8d   :  { %1756 = vmatpush1.bf16.msra.mxu0 %v5013_v31 }
  0x8e   :  { %1885 = vmatpush1.bf16.msra.mxu1 %v5016_v32  ;;  %1757 = vmatprep.subr.bf16.mxu0 %v5021_v33 }
  0x8f   :  { %1886 = vmatprep.subr.bf16.mxu1 %v5024_v34  ;;  %v5085_v34 = vld [vmem:[#allocation2 + $0x420] ss:$16 sps:$4 sm:$0xff]  }
  0x91   :  { %1758 = vmatpush1.bf16.msra.mxu0 %v5019_v35 }
  0x92   :  { %1887 = vmatpush1.bf16.msra.mxu1 %v5022_v38  ;;  %1759 = vmatprep.subr.bf16.mxu0 %v5027_v40  ;;  %v5093_v38 = vld [vmem:[#allocation2 + $0x444] ss:$16 sps:$4 sm:$0xff]   ;;  %v5096_v40 = vld [vmem:[#allocation2 + $0x44c] ss:$16 sps:$4 sm:$0xff]  }
  0x93   :  { %1888 = vmatprep.subr.bf16.mxu1 %v5030_v42 }
  0x95   :  { %1760 = vmatpush1.bf16.msra.mxu0 %v5025_v43 }
  0x96   :  { %1889 = vmatpush1.bf16.msra.mxu1 %v5028_v44  ;;  %1761 = vmatprep.subr.bf16.mxu0 %v5033_v45  ;;  %v5091_v45 = vld [vmem:[#allocation2 + $0x440] ss:$16 sps:$4 sm:$0xff]  }
  0x97   :  { %1890 = vmatprep.subr.bf16.mxu1 %v5036_v47  ;;  %v5094_v47 = vld [vmem:[#allocation2 + $0x448] ss:$16 sps:$4 sm:$0xff]  }
  0x99   :  { %1762 = vmatpush1.bf16.msra.mxu0 %v5031_v48 }
  0x9a   :  { %1891 = vmatpush1.bf16.msra.mxu1 %v5034_v49  ;;  %1763 = vmatprep.subr.bf16.mxu0 %v5039_v50  ;;  %v5099_v49 = vld [vmem:[#allocation2 + $0x464] ss:$16 sps:$4 sm:$0xff]   ;;  %v5102_v50 = vld [vmem:[#allocation2 + $0x46c] ss:$16 sps:$4 sm:$0xff]  }
  0x9b   :  { %1892 = vmatprep.subr.bf16.mxu1 %v5042_v52 }
  0x9d   :  { %1764 = vmatpush1.bf16.msra.mxu0 %v5037_v53 }
  0x9e   :  { %1893 = vmatpush1.bf16.msra.mxu1 %v5040_v54  ;;  %1765 = vmatprep.subr.bf16.mxu0 %v5045_v56  ;;  %v5097_v54 = vld [vmem:[#allocation2 + $0x460] ss:$16 sps:$4 sm:$0xff]  }
  0x9f   :  { %1894 = vmatprep.subr.bf16.mxu1 %v5048_v57  ;;  %v5100_v57 = vld [vmem:[#allocation2 + $0x468] ss:$16 sps:$4 sm:$0xff]  }
  0xa1   :  { %1766 = vmatpush1.bf16.msra.mxu0 %v5043_v59 }
  0xa2   :  { %1895 = vmatpush1.bf16.msra.mxu1 %v5046_v60  ;;  %1767 = vmatprep.subr.bf16.mxu0 %v5051_v61  ;;  %v5105_v60 = vld [vmem:[#allocation2 + $0x484] ss:$16 sps:$4 sm:$0xff]  }
  0xa3   :  { %1896 = vmatprep.subr.bf16.mxu1 %v5054_v62 }
  0xa5   :  { %1768 = vmatpush1.bf16.msra.mxu0 %v5049_v0 }
  0xa6   :  { %1897 = vmatpush1.bf16.msra.mxu1 %v5052_v1  ;;  %1769 = vmatprep.subr.bf16.mxu0 %v5057_v2  ;;  %v5679_v1 = vmov 683565275  }
  0xa7   :  { %1898 = vmatprep.subr.bf16.mxu1 %v5060_v3  ;;  %v5680_v3 = vmov 2475754826  }
  0xa9   :  { %1770 = vmatpush1.bf16.msra.mxu0 %v5055_v5 }
  0xaa   :  { %1899 = vmatpush1.bf16.msra.mxu1 %v5058_v6  ;;  %1771 = vmatprep.subr.bf16.mxu0 %v5063_v7  ;;  %v5681_v6 = vmov 2131351028  }
  0xab   :  { %1900 = vmatprep.subr.bf16.mxu1 %v5066_v8  ;;  %v5682_v8 = vmov 2102212464  }
  0xad   :  { %1772 = vmatpush1.bf16.msra.mxu0 %v5061_v9 }
  0xae   :  { %1901 = vmatpush1.bf16.msra.mxu1 %v5064_v10  ;;  %1773 = vmatprep.subr.bf16.mxu0 %v5069_v11  ;;  %v5683_v10 = vmov 920167782  }
  0xaf   :  { %1902 = vmatprep.subr.bf16.mxu1 %v5072_v12  ;;  %v5103_v12 = vld [vmem:[#allocation2 + $0x480] ss:$16 sps:$4 sm:$0xff]  }
  0xb1   :  { %1774 = vmatpush1.bf16.msra.mxu0 %v5067_v13  ;;  %v5106_v13 = vld [vmem:[#allocation2 + $0x488] ss:$16 sps:$4 sm:$0xff]  }
  0xb2   :  { %1903 = vmatpush1.bf16.msra.mxu1 %v5070_v14  ;;  %1775 = vmatprep.subr.bf16.mxu0 %v5075_v15 }
  0xb3   :  { %1904 = vmatprep.subr.bf16.mxu1 %v5078_v16 }
  0xb5   :  { %1776 = vmatpush1.bf16.msra.mxu0 %v5073_v17  ;;  %v5111_v17 = vld [vmem:[#allocation2 + $0x4a4] ss:$16 sps:$4 sm:$0xff]  }
  0xb6   :  { %1905 = vmatpush1.bf16.msra.mxu1 %v5076_v20  ;;  %1788 = vmatprep.subr.bf16.mxu0 %v5081_v21  ;;  %v5684_v20 = vmov 1326507024  }
  0xb7   :  { %v85_v25 = vpop.permute.xlu0 %84  ;;  %1917 = vmatprep.subr.bf16.mxu1 %v5084_v23 }
  0xb8   :  { %v5811_v27 = vmul.f32 %v5592_v22, %v85_v25  ;;  %1778 = vmatmul.mubr.bf16.vlgmr.msra.gmra.mrb[0].mxu0 %v525_v24 }
  0xb9   :  { %1789 = vmatpush1.bf16.msra.mxu0 %v5079_v26  ;;  %1907 = vmatmul.mubr.bf16.vlgmr.msra.gmra.mrb[0].mxu1 %v525_v24  ;;  %v5109_v26 = vld [vmem:[#allocation2 + $0x4a0] ss:$16 sps:$4 sm:$0xff]  }
  0xba   :  { %v94_v31 = vand.u32 2147483647, %v5811_v27  ;;  %v97_v32 = vand.u32 2139095040, %v5811_v27  ;;  %1918 = vmatpush1.bf16.msra.mxu1 %v5082_v28  ;;  %1790 = vmatprep.subr.bf16.mxu0 %v5087_v29  ;;  %v5112_v28 = vld [vmem:[#allocation2 + $0x4a8] ss:$16 sps:$4 sm:$0xff]   ;;  %vm96_vm15 = vcmp.lt.s32.totalorder %v5811_v27, 0 }
  0xbb   :  { %v90_v33 = vpop.permute.xlu0 %89  ;;  %1919 = vmatprep.subr.bf16.mxu1 %v5090_v30 }
  0xbc   :  { %v98_v35 = vshrl.u32 %v97_v32, 23  ;;  %v5815_v36 = vmul.f32 %v5592_v22, %v90_v33  ;;  %v101_v39 = vand.u32 8388607, %v94_v31  ;;  %v5114_v22 = vld [vmem:[#allocation2 + $0x4ac] ss:$16 sps:$4 sm:$0xff]  }
  0xbd   :  { %1791 = vmatpush1.bf16.msra.mxu0 %v5085_v34  ;;  %v5117_v33 = vld [vmem:[#allocation2 + $0x4c4] ss:$16 sps:$4 sm:$0xff]  }
  0xbe   :  { %v4268_v42 = vadd.s32 4294967169, %v98_v35  ;;  %v198_v43 = vand.u32 2147483647, %v5815_v36  ;;  %v201_v44 = vand.u32 2139095040, %v5815_v36  ;;  %1920 = vmatpush1.bf16.msra.mxu1 %v5088_v37  ;;  %1792 = vmatprep.subr.bf16.mxu0 %v5093_v38  ;;  %v102_v51 = vor.u32 8388608, %v101_v39 }
  0xbf   :  { %1921 = vmatprep.subr.bf16.mxu1 %v5096_v40  ;;  %v5120_v39 = vld [vmem:[#allocation2 + $0x4cc] ss:$16 sps:$4 sm:$0xff]  }
  0xc0   :  { %v104_v48 = vadd.s32 1, %v4268_v42  ;;  %v202_v52 = vshrl.u32 %v201_v44, 23  ;;  %v5823_v53 = vand.u32 8388607, %v198_v43  ;;  %v5827_v61 = vshll.u32 %v102_v51, 8 }
  0xc1   :  { %1793 = vmatpush1.bf16.msra.mxu0 %v5091_v45 }
  0xc2   :  { %vm105_vm1 = vcmp.gt.s32.totalorder %v104_v48, 0  ;;  %v4272_v56 = vadd.s32 4294967169, %v202_v52  ;;  %1922 = vmatpush1.bf16.msra.mxu1 %v5094_v47  ;;  %1794 = vmatprep.subr.bf16.mxu0 %v5099_v49  ;;  %v206_v62 = vor.u32 8388608, %v5823_v53 }
  0xc3   :  { %v106_v55 = vsel %vm105_vm1, %v104_v48, 0  ;;  %1923 = vmatprep.subr.bf16.mxu1 %v5102_v50  ;;  %vm5949_vm1 = vcmp.le.f32.partialorder %v94_v31, 0.7853982 }
  0xc4   :  { %v5825_v58 = vshrl.u32 %v106_v55, 5  ;;  %v108_v59 = vand.u32 31, %v106_v55  ;;  %v208_v5 = vadd.s32 1, %v4272_v56 }
  0xc5   :  { %1795 = vmatpush1.bf16.msra.mxu0 %v5097_v54  ;;  %v5115_v54 = vld [vmem:[#allocation2 + $0x4c0] ss:$16 sps:$4 sm:$0xff]  }
  0xc6   :  { %v109_v0 = vsub.s32 32, %v108_v59  ;;  %v111_v2 = vshll.u32 %v5679_v1, %v108_v59  ;;  %v114_v4 = vshll.u32 %v5680_v3, %v108_v59  ;;  %v117_v7 = vshll.u32 %v5681_v6, %v108_v59  ;;  %1924 = vmatpush1.bf16.msra.mxu1 %v5100_v57  ;;  %1796 = vmatprep.subr.bf16.mxu0 %v5105_v60  ;;  %v5118_v60 = vld [vmem:[#allocation2 + $0x4c8] ss:$16 sps:$4 sm:$0xff]  }
  0xc7   :  { %v120_v9 = vshll.u32 %v5682_v8, %v108_v59  ;;  %v123_v11 = vshll.u32 %v5683_v10, %v108_v59  ;;  %vm126_vm2 = vcmp.lt.s32.totalorder %v5825_v58, 1  ;;  %vm127_vm3 = vcmp.lt.s32.totalorder %v5825_v58, 2  ;;  %1925 = vmatprep.subr.bf16.mxu1 %v5108_v63  ;;  %v5123_v63 = vld [vmem:[#allocation2 + $0x4e4] ss:$16 sps:$4 sm:$0xff]  }
  0xc8   :  { %v112_v14 = vshrl.u32 %v5680_v3, %v109_v0  ;;  %v115_v15 = vshrl.u32 %v5681_v6, %v109_v0  ;;  %v118_v16 = vshrl.u32 %v5682_v8, %v109_v0  ;;  %v110_v18 = vshrl.u32 %v5679_v1, %v109_v0 }
  0xc9   :  { %v121_v19 = vshrl.u32 %v5683_v10, %v109_v0  ;;  %v124_v21 = vshrl.u32 %v5684_v20, %v109_v0  ;;  %vm128_vm4 = vcmp.lt.s32.totalorder %v5825_v58, 3  ;;  %vm209_vm5 = vcmp.gt.s32.totalorder %v208_v5, 0  ;;  %1797 = vmatpush1.bf16.msra.mxu0 %v5103_v12 }
  0xca   :  { %v113_v23 = vor.u32 %v112_v14, %v111_v2  ;;  %v116_v24 = vor.u32 %v115_v15, %v114_v4  ;;  %v119_v25 = vor.u32 %v118_v16, %v117_v7  ;;  %vm129_vm6 = vcmp.lt.s32.totalorder %v5825_v58, 4  ;;  %1926 = vmatpush1.bf16.msra.mxu1 %v5106_v13  ;;  %1798 = vmatprep.subr.bf16.mxu0 %v5111_v17  ;;  %v5126_v4 = vld [vmem:[#allocation2 + $0x4ec] ss:$16 sps:$4 sm:$0xff]   ;;  %v5129_v16 = vld [vmem:[#allocation2 + $0x504] ss:$16 sps:$4 sm:$0xff]  }
  0xcb   :  { %v122_v29 = vor.u32 %v121_v19, %v120_v9  ;;  %v125_v30 = vor.u32 %v124_v21, %v123_v11  ;;  %v210_v32 = vsel %vm209_vm5, %v208_v5, 0  ;;  %1927 = vmatprep.subr.bf16.mxu1 %v5114_v22  ;;  %v5877_v58 = vshll.u32 %v206_v62, 8  ;;  %v5121_v62 = vld [vmem:[#allocation2 + $0x4e0] ss:$16 sps:$4 sm:$0xff]   ;;  %v5132_v21 = vld [vmem:[#allocation2 + $0x50c] ss:$16 sps:$4 sm:$0xff]  }
  0xcc   :  { %v130_v34 = vsel %vm126_vm2, %v110_v18, %v113_v23  ;;  %v131_v35 = vsel %vm129_vm6, %v119_v25, 2102212464  ;;  %v134_v37 = vsel %vm126_vm2, %v113_v23, %v116_v24  ;;  %v138_v38 = vsel %vm126_vm2, %v116_v24, %v119_v25  ;;  %v5127_v19 = vld [vmem:[#allocation2 + $0x500] ss:$16 sps:$4 sm:$0xff]  }
  0xcd   :  { %v132_v40 = vsel %vm128_vm4, %v116_v24, %v131_v35  ;;  %v135_v42 = vsel %vm129_vm6, %v122_v29, 920167782  ;;  %v139_v44 = vsel %vm129_vm6, %v125_v30, 1326507024  ;;  %v5853_v45 = vshrl.u32 %v210_v32, 5  ;;  %1799 = vmatpush1.bf16.msra.mxu0 %v5109_v26 }
  0xce   :  { %v133_v47 = vsel %vm127_vm3, %v130_v34, %v132_v40  ;;  %v136_v48 = vsel %vm128_vm4, %v119_v25, %v135_v42  ;;  %v140_v49 = vsel %vm128_vm4, %v122_v29, %v139_v44  ;;  %v212_v50 = vand.u32 31, %v210_v32  ;;  %1928 = vmatpush1.bf16.msra.mxu1 %v5112_v28  ;;  %1800 = vmatprep.subr.bf16.mxu0 %v5117_v33  ;;  %v5135_v32 = vld [vmem:[#allocation2 + $0x524] ss:$16 sps:$4 sm:$0xff]   ;;  %v5138_v33 = vld [vmem:[#allocation2 + $0x52c] ss:$16 sps:$4 sm:$0xff]  }
  0xcf   :  { %v137_v51 = vsel %vm127_vm3, %v134_v37, %v136_v48  ;;  %v141_v52 = vsel %vm127_vm3, %v138_v38, %v140_v49  ;;  %v149_v0 = vmul.u32 %v5827_v61, %v133_v47  ;;  %1929 = vmatprep.subr.bf16.mxu1 %v5120_v39  ;;  %vm230_vm7 = vcmp.lt.s32.totalorder %v5853_v45, 1  ;;  %v5133_v49 = vld [vmem:[#allocation2 + $0x520] ss:$16 sps:$4 sm:$0xff]  }
  0xd0   :  { %v5866_v55 = vmul.u32.u64.low %v5827_v61, %v141_v52  ;;  %v5867_v56 = vmul.u32.u64.high %v5827_v61, %v141_v52, %v5866_v55  ;;  %v5870_v57 = vmul.u32.u64.low %v5827_v61, %v137_v51  ;;  %v5871_v59 = vmul.u32.u64.high %v5827_v61, %v137_v51, %v5870_v57  ;;  %v5136_v52 = vld [vmem:[#allocation2 + $0x528] ss:$16 sps:$4 sm:$0xff]  }
  0xd1   :  { %v213_v2 = vsub.s32 32, %v212_v50  ;;  %v215_v5 = vshll.u32 %v5679_v1, %v212_v50  ;;  %v218_v7 = vshll.u32 %v5680_v3, %v212_v50  ;;  %v221_v9 = vshll.u32 %v5681_v6, %v212_v50  ;;  %1801 = vmatpush1.bf16.msra.mxu0 %v5115_v54  ;;  %v5141_v54 = vld [vmem:[#allocation2 + $0x544] ss:$16 sps:$4 sm:$0xff]  }
  0xd2   :  { %v224_v53 = vshll.u32 %v5682_v8, %v212_v50  ;;  %vm151_vm8 = vc.u32 %v5867_v56, %v5870_v57  ;;  %v152_v13 = vadd.s32 1, %v5871_v59  ;;  %v227_v15 = vshll.u32 %v5683_v10, %v212_v50  ;;  %1930 = vmatpush1.bf16.msra.mxu1 %v5118_v60  ;;  %1802 = vmatprep.subr.bf16.mxu0 %v5123_v63  ;;  %v5144_v60 = vld [vmem:[#allocation2 + $0x54c] ss:$16 sps:$4 sm:$0xff]  }
  0xd3   :  { %v216_v11 = vshrl.u32 %v5680_v3, %v213_v2  ;;  %v219_v12 = vshrl.u32 %v5681_v6, %v213_v2  ;;  %v222_v61 = vshrl.u32 %v5682_v8, %v213_v2  ;;  %v225_v14 = vshrl.u32 %v5683_v10, %v213_v2  ;;  %v5124_v3 = vld [vmem:[#allocation2 + $0x4e8] ss:$16 sps:$4 sm:$0xff]   ;;  %1931 = vmatprep.subr.bf16.mxu1 %v5126_v4 }
  0xd4   :  { %v228_v8 = vshrl.u32 %v5684_v20, %v213_v2  ;;  %v153_v22 = vsel %vm151_vm8, %v152_v13, %v5871_v59  ;;  %vm231_vm9 = vcmp.lt.s32.totalorder %v5853_v45, 2  ;;  %vm233_vm10 = vcmp.lt.s32.totalorder %v5853_v45, 4  ;;  %v5130_v10 = vld [vmem:[#allocation2 + $0x508] ss:$16 sps:$4 sm:$0xff]  }
  0xd5   :  { %v217_v6 = vor.u32 %v216_v11, %v215_v5  ;;  %v220_v17 = vor.u32 %v219_v12, %v218_v7  ;;  %v223_v18 = vor.u32 %v222_v61, %v221_v9  ;;  %v226_v23 = vor.u32 %v225_v14, %v224_v53  ;;  %1803 = vmatpush1.bf16.msra.mxu0 %v5121_v62  ;;  %v5142_v4 = vld [vmem:[#allocation2 + $0x548] ss:$16 sps:$4 sm:$0xff]   ;;  %v5147_v7 = vld [vmem:[#allocation2 + $0x564] ss:$16 sps:$4 sm:$0xff]   ;;  %v5150_v9 = vld [vmem:[#allocation2 + $0x56c] ss:$16 sps:$4 sm:$0xff]  }
  0xd6   :  { %v154_v24 = vadd.s32 %v153_v22, %v149_v0  ;;  %v229_v25 = vor.u32 %v228_v8, %v227_v15  ;;  %vm232_vm11 = vcmp.lt.s32.totalorder %v5853_v45, 3  ;;  %v214_v20 = vshrl.u32 %v5679_v1, %v213_v2  ;;  %1932 = vmatpush1.bf16.msra.mxu1 %v5124_v3  ;;  %1804 = vmatprep.subr.bf16.mxu0 %v5129_v16  ;;  %v5139_v2 = vld [vmem:[#allocation2 + $0x540] ss:$16 sps:$4 sm:$0xff]   ;;  %v5148_v62 = vld [vmem:[#allocation2 + $0x568] ss:$16 sps:$4 sm:$0xff]  }
  0xd7   :  { %v235_v26 = vsel %vm233_vm10, %v223_v18, 2102212464  ;;  %v238_v28 = vsel %vm230_vm7, %v217_v6, %v220_v17  ;;  %v239_v29 = vsel %vm233_vm10, %v226_v23, 920167782  ;;  %v242_v30 = vsel %vm230_vm7, %v220_v17, %v223_v18  ;;  %1933 = vmatprep.subr.bf16.mxu1 %v5132_v21  ;;  %v5145_v53 = vld [vmem:[#allocation2 + $0x560] ss:$16 sps:$4 sm:$0xff]  }
  0xd8   :  { %v155_v34 = vadd.s32 536870912, %v154_v24  ;;  %v240_v35 = vsel %vm232_vm11, %v223_v18, %v239_v29  ;;  %v243_v1 = vsel %vm233_vm10, %v229_v25, 1326507024  ;;  %v234_v37 = vsel %vm230_vm7, %v214_v20, %v217_v6  ;;  %v5151_v15 = vld [vmem:[#allocation2 + $0x580] ss:$16 sps:$4 sm:$0xff]  }
  0xd9   :  { %v236_v38 = vsel %vm232_vm11, %v220_v17, %v235_v26  ;;  %v241_v39 = vsel %vm231_vm9, %v238_v28, %v240_v35  ;;  %v244_v40 = vsel %vm232_vm11, %v226_v23, %v243_v1  ;;  %1805 = vmatpush1.bf16.msra.mxu0 %v5127_v19  ;;  %v5156_v3 = vld [vmem:[#allocation2 + $0x58c] ss:$16 sps:$4 sm:$0xff]   ;;  %v5154_v6 = vld [vmem:[#allocation2 + $0x588] ss:$16 sps:$4 sm:$0xff]   ;;  %v5159_v17 = vld [vmem:[#allocation2 + $0x5a4] ss:$16 sps:$4 sm:$0xff]   ;;  %v150_v25 = vadd.s32 %v5870_v57, %v5867_v56 }
  0xda   :  { %v5918_v42 = vshrl.u32 %v155_v34, 30  ;;  %v245_v44 = vsel %vm231_vm9, %v242_v30, %v244_v40  ;;  %v5923_v47 = vmul.u32.u64.low %v5877_v58, %v241_v39  ;;  %v5924_v48 = vmul.u32.u64.high %v5877_v58, %v241_v39, %v5923_v47  ;;  %1934 = vmatpush1.bf16.msra.mxu1 %v5130_v10  ;;  %1806 = vmatprep.subr.bf16.mxu0 %v5135_v32  ;;  %v5162_v8 = vld [vmem:[#allocation2 + $0x5ac] ss:$16 sps:$4 sm:$0xff]   ;;  %v5157_v21 = vld [vmem:[#allocation2 + $0x5a0] ss:$16 sps:$4 sm:$0xff]  }
  0xdb   :  { %v5928_v50 = vmul.u32.u64.low %v5877_v58, %v245_v44  ;;  %v5929_v51 = vmul.u32.u64.high %v5877_v58, %v245_v44, %v5928_v50  ;;  %v237_v59 = vsel %vm231_vm9, %v234_v37, %v236_v38  ;;  %1935 = vmatprep.subr.bf16.mxu1 %v5138_v33  ;;  %v5160_v10 = vld [vmem:[#allocation2 + $0x5a8] ss:$16 sps:$4 sm:$0xff]   ;;  %v5168_v28 = vld [vmem:[#allocation2 + $0x5cc] ss:$16 sps:$4 sm:$0xff]   ;;  %v5163_v34 = vld [vmem:[#allocation2 + $0x5c0] ss:$16 sps:$4 sm:$0xff]  }
  0xdc   :  { %v157_v55 = vshll.u32 %v5918_v42, 30  ;;  %v256_v0 = vadd.s32 1, %v5924_v48  ;;  %v253_v5 = vmul.u32 %v5877_v58, %v237_v59  ;;  %v5153_v58 = vld [vmem:[#allocation2 + $0x584] ss:$16 sps:$4 sm:$0xff]   ;;  %v5166_v1 = vld [vmem:[#allocation2 + $0x5c8] ss:$16 sps:$4 sm:$0xff]  }
  0xdd   :  { %1807 = vmatpush1.bf16.msra.mxu0 %v5133_v49  ;;  %vm255_vm12 = vc.u32 %v5929_v51, %v5923_v47  ;;  %v5171_v37 = vld [vmem:[#allocation2 + $0x5e4] ss:$16 sps:$4 sm:$0xff]   ;;  %v5174_v40 = vld [vmem:[#allocation2 + $0x5ec] ss:$16 sps:$4 sm:$0xff]   ;;  %v5169_v44 = vld [vmem:[#allocation2 + $0x5e0] ss:$16 sps:$4 sm:$0xff]  }
  0xde   :  { %v158_v63 = vsub.s32 %v154_v24, %v157_v55  ;;  %1936 = vmatpush1.bf16.msra.mxu1 %v5136_v52  ;;  %1808 = vmatprep.subr.bf16.mxu0 %v5141_v54  ;;  %v257_v45 = vsel %vm255_vm12, %v256_v0, %v5924_v48  ;;  %v5165_v24 = vld [vmem:[#allocation2 + $0x5c4] ss:$16 sps:$4 sm:$0xff]   ;;  %v5172_v49 = vld [vmem:[#allocation2 + $0x5e8] ss:$16 sps:$4 sm:$0xff]   ;;  %v5180_v55 = vld [vmem:[#allocation4 + $0xc] ss:$16 sps:$4 sm:$0xff]   ;;  %vm186_vm12 = vweird.f32 %v5811_v27 }
  0xdf   :  { %1937 = vmatprep.subr.bf16.mxu1 %v5144_v60  ;;  %v258_v12 = vadd.s32 %v257_v45, %v253_v5  ;;  %v5177_v50 = vld [vmem:[#allocation4 + $0x4] ss:$16 sps:$4 sm:$0xff]   ;;  %vm200_vm2 = vcmp.lt.s32.totalorder %v5815_v36, 0  ;;  %vm199_vm3 = vcmp.le.f32.partialorder %v198_v43, 0.7853982 }
  0xe0   :  { %v160_v11 = vsub.s32 0, %v158_v63 }
  0xe1   :  { %1809 = vmatpush1.bf16.msra.mxu0 %v5139_v2  ;;  %v259_v13 = vadd.s32 536870912, %v258_v12 }
  0xe2   :  { %v4269_v61 = vmin.u32 %v160_v11, %v158_v63  ;;  %1938 = vmatpush1.bf16.msra.mxu1 %v5142_v4  ;;  %1810 = vmatprep.subr.bf16.mxu0 %v5147_v7  ;;  %v5187_v11 = vld [vmem:[#allocation4 + $0x40] ss:$16 sps:$4 sm:$0xff]  }
  0xe3   :  { %1939 = vmatprep.subr.bf16.mxu1 %v5150_v9  ;;  %v5939_v16 = vshrl.u32 %v259_v13, 30 }
  0xe4   :  { %v162_v14 = vclz %v4269_v61  ;;  %v180_v61 = vsub.s32 4, %v5918_v42 }
  0xe5   :  { %1811 = vmatpush1.bf16.msra.mxu0 %v5145_v53  ;;  %v261_v19 = vshll.u32 %v5939_v16, 30 }
  0xe6   :  { %v4270_v18 = vadd.s32 4294967294, %v162_v14  ;;  %1940 = vmatpush1.bf16.msra.mxu1 %v5148_v62  ;;  %1812 = vmatprep.subr.bf16.mxu0 %v5153_v58  ;;  %v181_v13 = vsel %vm96_vm15, %v180_v61, %v5918_v42  ;;  %v284_v58 = vsub.s32 4, %v5939_v16  ;;  %v5201_v61 = vld [vmem:[#allocation4 + $0x84] ss:$16 sps:$4 sm:$0xff]  }
  0xe7   :  { %1941 = vmatprep.subr.bf16.mxu1 %v5156_v3  ;;  %v262_v23 = vsub.s32 %v258_v12, %v261_v19  ;;  %v183_v3 = vsel %vm5949_vm1, 0, %v181_v13  ;;  %v5207_v13 = vld [vmem:[#allocation4 + $0xa4] ss:$16 sps:$4 sm:$0xff]  }
  0xe8   :  { %vm4271_vm13 = vcmp.lt.s32.totalorder %v4270_v18, 0 }
  0xe9   :  { %v165_v22 = vsel %vm4271_vm13, 0, %v4270_v18  ;;  %1813 = vmatpush1.bf16.msra.mxu0 %v5151_v15  ;;  %v264_v29 = vsub.s32 0, %v262_v23 }
  0xea   :  { %v166_v26 = vsub.s32 32, %v165_v22  ;;  %v170_v20 = vsub.s32 4294967266, %v165_v22  ;;  %1942 = vmatpush1.bf16.msra.mxu1 %v5154_v6  ;;  %1814 = vmatprep.subr.bf16.mxu0 %v5159_v17  ;;  %v167_v30 = vshll.u32 %v158_v63, %v165_v22  ;;  %v254_v63 = vadd.s32 %v5923_v47, %v5929_v51 }
  0xeb   :  { %1943 = vmatprep.subr.bf16.mxu1 %v5162_v8  ;;  %v4273_v35 = vmin.u32 %v264_v29, %v262_v23  ;;  %v285_v6 = vsel %vm200_vm2, %v284_v58, %v5939_v16  ;;  %v187_v8 = vadd.s32 3, %v183_v3  ;;  %v395_v22 = vand.u32 3, %v183_v3  ;;  %v5210_v58 = vld [vmem:[#allocation4 + $0xac] ss:$16 sps:$4 sm:$0xff]   ;;  %v5213_v3 = vld [vmem:[#allocation4 + $0xc4] ss:$16 sps:$4 sm:$0xff]  }
  0xec   :  { %v168_v32 = vshrl.u32 %v150_v25, %v166_v26  ;;  %v171_v33 = vadd.s32 127, %v170_v20  ;;  %v287_v42 = vsel %vm199_vm3, 0, %v285_v6  ;;  %v5216_v6 = vld [vmem:[#allocation4 + $0xcc] ss:$16 sps:$4 sm:$0xff]  }
  0xed   :  { %1815 = vmatpush1.bf16.msra.mxu0 %v5157_v21  ;;  %v266_v56 = vclz %v4273_v35  ;;  %vm397_vm4 = vcmp.eq.s32.totalorder %v395_v22, 0  ;;  %vm400_vm5 = vcmp.eq.s32.totalorder %v395_v22, 2  ;;  %v498_v16 = vand.u32 3, %v287_v42 }
  0xee   :  { %v169_v38 = vor.u32 %v168_v32, %v167_v30  ;;  %v172_v39 = vshll.u32 %v171_v33, 23  ;;  %1944 = vmatpush1.bf16.msra.mxu1 %v5160_v10  ;;  %1816 = vmatprep.subr.bf16.mxu0 %v5165_v24  ;;  %v291_v10 = vadd.s32 3, %v287_v42  ;;  %vm396_vm9 = vcmp.lt.s32.totalorder %v395_v22, 2  ;;  %v5217_v42 = vld [vmem:[#allocation4 + $0xe0] ss:$16 sps:$4 sm:$0xff]  }
  0xef   :  { %1945 = vmatprep.subr.bf16.mxu1 %v5168_v28  ;;  %v4274_v48 = vadd.s32 4294967294, %v266_v56  ;;  %vm499_vm10 = vcmp.lt.s32.totalorder %v498_v16, 2  ;;  %vm500_vm11 = vcmp.eq.s32.totalorder %v498_v16, 0  ;;  %v5225_v22 = vld [vmem:[#allocation4 + $0x104] ss:$16 sps:$4 sm:$0xff]  }
  0xf0   :  { %v173_v57 = vor.u32 4788187, %v172_v39  ;;  %v176_v54 = vcvt.s32.f32 %v169_v38  ;;  %v292_v43 = vand.u32 3, %v291_v10  ;;  %v522_v38 = vld [vmem:[%s6074_s0 + $0x48] sm:$0xff]  ;;  %v5223_v10 = vld [vmem:[#allocation4 + $0x100] ss:$16 sps:$4 sm:$0xff]  }
  0xf1   :  { %1817 = vmatpush1.bf16.msra.mxu0 %v5163_v34  ;;  %vm4275_vm14 = vcmp.lt.s32.totalorder %v4274_v48, 0 }
  0xf2   :  { %v174_v52 = vand.u32 2147483647, %v173_v57  ;;  %1946 = vmatpush1.bf16.msra.mxu1 %v5166_v1  ;;  %1818 = vmatprep.subr.bf16.mxu0 %v5171_v37  ;;  %v269_v60 = vsel %vm4275_vm14, 0, %v4274_v48  ;;  %vm297_vm13 = vcmp.eq.s32.totalorder %v292_v43, 2  ;;  %vm503_vm14 = vcmp.eq.s32.totalorder %v498_v16, 2  ;;  %v517_v37 = vld [vmem:[%s6074_s0 + $0x20] sm:$0xff] }
  0xf3   :  { %1947 = vmatprep.subr.bf16.mxu1 %v5174_v40  ;;  %v270_v0 = vsub.s32 32, %v269_v60  ;;  %v274_v2 = vsub.s32 4294967266, %v269_v60  ;;  %v271_v5 = vshll.u32 %v262_v23, %v269_v60  ;;  %v188_v23 = vand.u32 3, %v187_v8  ;;  %v5219_v8 = vld [vmem:[#allocation4 + $0xe4] ss:$16 sps:$4 sm:$0xff]  }
  0xf4   :  { %v177_v59 = vmul.f32 %v176_v54, %v174_v52  ;;  %v5175_v54 = vld [vmem:[#allocation4] ss:$16 sps:$4 sm:$0xff]   ;;  %v5234_v16 = vld [vmem:[#allocation4 + $0x12c] ss:$16 sps:$4 sm:$0xff]  }
  0xf5   :  { %1819 = vmatpush1.bf16.msra.mxu0 %v5169_v44  ;;  %v272_v7 = vshrl.u32 %v254_v63, %v270_v0  ;;  %v275_v9 = vadd.s32 127, %v274_v2  ;;  %vm190_vm6 = vcmp.eq.s32.totalorder %v188_v23, 0  ;;  %vm193_vm7 = vcmp.eq.s32.totalorder %v188_v23, 2  ;;  %v5183_v0 = vld [vmem:[#allocation4 + $0x24] ss:$16 sps:$4 sm:$0xff]  }
  0xf6   :  { %v178_v4 = vxor.u32 2147483648, %v177_v59  ;;  %1948 = vmatpush1.bf16.msra.mxu1 %v5172_v49  ;;  %2762 = vmatprep.subr.bf16.mxu0 %v5177_v50  ;;  %vm189_vm8 = vcmp.lt.s32.totalorder %v188_v23, 2  ;;  %v527_v63 = vpack.c.bf16 %v522_v38, %v517_v37  ;;  %v5186_v2 = vld [vmem:[#allocation4 + $0x2c] ss:$16 sps:$4 sm:$0xff]   ;;  %v5247_v38 = vld [vmem:[#allocation4 + $0x180] ss:$16 sps:$4 sm:$0xff]  }
  0xf7   :  { %2848 = vmatprep.subr.bf16.mxu1 %v5180_v55  ;;  %v273_v45 = vor.u32 %v272_v7, %v271_v5  ;;  %v276_v12 = vshll.u32 %v275_v9, 23  ;;  %v5178_v55 = vld [vmem:[#allocation4 + $0x8] ss:$16 sps:$4 sm:$0xff]   ;;  %v5189_v7 = vld [vmem:[#allocation4 + $0x44] ss:$16 sps:$4 sm:$0xff]  }
  0xf8   :  { %v179_v47 = vsel %vm96_vm15, %v178_v4, %v177_v59  ;;  %vm293_vm15 = vcmp.lt.s32.totalorder %v292_v43, 2  ;;  %v5184_v5 = vld [vmem:[#allocation4 + $0x28] ss:$16 sps:$4 sm:$0xff]   ;;  %v5192_v9 = vld [vmem:[#allocation4 + $0x4c] ss:$16 sps:$4 sm:$0xff]  }
  0xf9   :  { %v182_v51 = vsel %vm5949_vm1, %v5811_v27, %v179_v47  ;;  %v277_v53 = vor.u32 4788187, %v276_v12  ;;  %v280_v31 = vcvt.s32.f32 %v273_v45  ;;  %vm294_vm1 = vcmp.eq.s32.totalorder %v292_v43, 0  ;;  %v5190_v47 = vld [vmem:[#allocation4 + $0x48] ss:$16 sps:$4 sm:$0xff]  }
  0xfa   :  { %5593 = vcosq.f32 %v182_v51  ;;  %v5193_v45 = vld [vmem:[#allocation4 + $0x60] ss:$16 sps:$4 sm:$0xff]   ;;  %v5196_v12 = vld [vmem:[#allocation4 + $0x68] ss:$16 sps:$4 sm:$0xff]   ;;  %v5228_v23 = vld [vmem:[#allocation4 + $0x10c] ss:$16 sps:$4 sm:$0xff]  }
  0xfb   :  { %5595 = vsinq.f32 %v182_v51  ;;  %v278_v62 = vand.u32 2147483647, %v277_v53  ;;  %v5198_v51 = vld [vmem:[#allocation4 + $0x6c] ss:$16 sps:$4 sm:$0xff]   ;;  %v5229_v43 = vld [vmem:[#allocation4 + $0x120] ss:$16 sps:$4 sm:$0xff]  }
  0xfc   :  { %v5204_v53 = vld [vmem:[#allocation4 + $0x8c] ss:$16 sps:$4 sm:$0xff]  }
  0xfd   :  { %v281_v14 = vmul.f32 %v280_v31, %v278_v62  ;;  %v5199_v62 = vld [vmem:[#allocation4 + $0x80] ss:$16 sps:$4 sm:$0xff]   ;;  %v5202_v31 = vld [vmem:[#allocation4 + $0x88] ss:$16 sps:$4 sm:$0xff]   ;;  %v5252_v37 = vld [vmem:[#allocation4 + $0x18c] ss:$16 sps:$4 sm:$0xff]  }
  0xff   :  { %v282_v15 = vxor.u32 2147483648, %v281_v14 }
 0x101   :  { %v283_v17 = vsel %vm200_vm2, %v282_v15, %v281_v14  ;;  %vm290_vm2 = vweird.f32 %v5815_v36  ;;  %v5205_v14 = vld [vmem:[#allocation4 + $0xa0] ss:$16 sps:$4 sm:$0xff]   ;;  %v5208_v15 = vld [vmem:[#allocation4 + $0xa8] ss:$16 sps:$4 sm:$0xff]  }
 0x102   :  { %v286_v18 = vsel %vm199_vm3, %v5815_v36, %v283_v17  ;;  %v5181_v36 = vld [vmem:[#allocation4 + $0x20] ss:$16 sps:$4 sm:$0xff]  }
 0x103   :  { %5597 = vcosq.f32 %v286_v18  ;;  %v5211_v17 = vld [vmem:[#allocation4 + $0xc0] ss:$16 sps:$4 sm:$0xff]  }
 0x104   :  { %v5594_v19 = vpop.eup %5593  ;;  %5599 = vsinq.f32 %v286_v18  ;;  %v5214_v18 = vld [vmem:[#allocation4 + $0xc8] ss:$16 sps:$4 sm:$0xff]  }
 0x105   :  { %v5596_v21 = vpop.eup %5595  ;;  %v194_v25 = vxor.u32 2147483648, %v5594_v19 }
 0x106   :  { %v191_v24 = vxor.u32 2147483648, %v5596_v21 }
 0x107   :  { %v195_v20 = vsel %vm193_vm7, %v194_v25, %v5596_v21  ;;  %v402_v29 = vsel %vm400_vm5, %v194_v25, %v5596_v21  ;;  %v5220_v21 = vld [vmem:[#allocation4 + $0xe8] ss:$16 sps:$4 sm:$0xff]   ;;  %v5231_v25 = vld [vmem:[#allocation4 + $0x124] ss:$16 sps:$4 sm:$0xff]  }
 0x108   :  { %v192_v26 = vsel %vm190_vm6, %v5594_v19, %v191_v24  ;;  %v399_v28 = vsel %vm397_vm4, %v5594_v19, %v191_v24  ;;  %v5222_v19 = vld [vmem:[#allocation4 + $0xec] ss:$16 sps:$4 sm:$0xff]   ;;  %v5226_v24 = vld [vmem:[#allocation4 + $0x108] ss:$16 sps:$4 sm:$0xff]  }
 0x109   :  { %v196_v33 = vsel %vm189_vm8, %v192_v26, %v195_v20  ;;  %v403_v35 = vsel %vm396_vm9, %v399_v28, %v402_v29  ;;  %v5232_v26 = vld [vmem:[#allocation4 + $0x128] ss:$16 sps:$4 sm:$0xff]   ;;  %v5237_v20 = vld [vmem:[#allocation4 + $0x144] ss:$16 sps:$4 sm:$0xff]   ;;  %v5240_v28 = vld [vmem:[#allocation4 + $0x14c] ss:$16 sps:$4 sm:$0xff]  }
 0x10a   :  { %v197_v56 = vsel %vm186_vm12, nan, %v196_v33  ;;  %v404_v44 = vsel %vm186_vm12, nan, %v403_v35  ;;  %v5235_v29 = vld [vmem:[#allocation4 + $0x140] ss:$16 sps:$4 sm:$0xff]   ;;  %v5246_v33 = vld [vmem:[#allocation4 + $0x16c] ss:$16 sps:$4 sm:$0xff]  }
 0x10b   :  { %v510_v59 = vsel %vm73_vm0, %v197_v56, %v404_v44  ;;  %v5244_v35 = vld [vmem:[#allocation4 + $0x168] ss:$16 sps:$4 sm:$0xff]   ;;  %v5258_v56 = vld [vmem:[#allocation4 + $0x1ac] ss:$16 sps:$4 sm:$0xff]  }
 0x10c   :  { %v5256_v44 = vld [vmem:[#allocation4 + $0x1a8] ss:$16 sps:$4 sm:$0xff]  }
 0x10d   :  { %v5598_v30 = vpop.eup %5597 }
 0x10e   :  { %v5600_v32 = vpop.eup %5599  ;;  %v298_v34 = vxor.u32 2147483648, %v5598_v30 }
 0x10f   :  { %v295_v1 = vxor.u32 2147483648, %v5600_v32 }
 0x110   :  { %v299_v39 = vsel %vm297_vm13, %v298_v34, %v5600_v32  ;;  %v505_v40 = vsel %vm503_vm14, %v298_v34, %v5600_v32  ;;  %v5243_v32 = vld [vmem:[#allocation4 + $0x164] ss:$16 sps:$4 sm:$0xff]   ;;  %v5241_v34 = vld [vmem:[#allocation4 + $0x160] ss:$16 sps:$4 sm:$0xff]  }
 0x111   :  { %v296_v57 = vsel %vm294_vm1, %v5598_v30, %v295_v1  ;;  %v502_v48 = vsel %vm500_vm11, %v5598_v30, %v295_v1  ;;  %v5238_v30 = vld [vmem:[#allocation4 + $0x148] ss:$16 sps:$4 sm:$0xff]   ;;  %v5249_v1 = vld [vmem:[#allocation4 + $0x184] ss:$16 sps:$4 sm:$0xff]  }
 0x112   :  { %v300_v27 = vsel %vm293_vm15, %v296_v57, %v299_v39  ;;  %v506_v49 = vsel %vm499_vm10, %v502_v48, %v505_v40  ;;  %v5250_v39 = vld [vmem:[#allocation4 + $0x188] ss:$16 sps:$4 sm:$0xff]   ;;  %v5255_v40 = vld [vmem:[#allocation4 + $0x1a4] ss:$16 sps:$4 sm:$0xff]   ;;  %v5253_v57 = vld [vmem:[#allocation4 + $0x1a0] ss:$16 sps:$4 sm:$0xff]  }
 0x113   :  { %v301_v50 = vsel %vm290_vm2, nan, %v300_v27  ;;  %v507_v52 = vsel %vm290_vm2, nan, %v506_v49  ;;  %v5261_v48 = vld [vmem:[#allocation4 + $0x1c4] ss:$16 sps:$4 sm:$0xff]   ;;  %v5264_v27 = vld [vmem:[#allocation4 + $0x1cc] ss:$16 sps:$4 sm:$0xff]  }
 0x114   :  { %v511_v60 = vsel %vm73_vm0, %v301_v50, %v507_v52  ;;  %v5259_v49 = vld [vmem:[#allocation4 + $0x1c0] ss:$16 sps:$4 sm:$0xff]   ;;  %v5262_v50 = vld [vmem:[#allocation4 + $0x1c8] ss:$16 sps:$4 sm:$0xff]   ;;  %v5267_v52 = vld [vmem:[#allocation4 + $0x1e4] ss:$16 sps:$4 sm:$0xff]  }
 0x115   :  { %v512_v4 = vpack.c.bf16 %v511_v60, %v510_v59  ;;  %v5268_v59 = vld [vmem:[#allocation4 + $0x1e8] ss:$16 sps:$4 sm:$0xff]   ;;  %v5273_v60 = vld [vmem:[#allocation4 + $0x204] ss:$16 sps:$4 sm:$0xff]  }
 0x117   :  { %1820 = vmatprep.mubr.bf16.mxu0 %v512_v4  ;;  %1949 = vmatprep.mubr.bf16.mxu1 %v512_v4 }
 0x118   :  { %1821 = vmatmul.mubr.bf16.vlgmr.msra.gmra.mrb[0].mxu0 %v527_v63  ;;  %1950 = vmatmul.mubr.bf16.vlgmr.msra.gmra.mrb[0].mxu1 %v527_v63  ;;  %v5276_v63 = vld [vmem:[#allocation4 + $0x20c] ss:$16 sps:$4 sm:$0xff]  }
 0x119   :  { %2763 = vmatpush1.bf16.msra.mxu0 %v5175_v54  ;;  %2849 = vmatpush1.bf16.msra.mxu1 %v5178_v55  ;;  %v5270_v54 = vld [vmem:[#allocation4 + $0x1ec] ss:$16 sps:$4 sm:$0xff]   ;;  %v5265_v55 = vld [vmem:[#allocation4 + $0x1e0] ss:$16 sps:$4 sm:$0xff]  }
 0x11a   :  { %2764 = vmatprep.subr.bf16.mxu0 %v5183_v0  ;;  %2850 = vmatprep.subr.bf16.mxu1 %v5186_v2  ;;  %v5984_v0 = vshrl.u32 %v71_v41, 7 }
 0x11c   :  { %v5987_v2 = vsub.s32 0, %v5984_v0  ;;  %v5990_v4 = vsub.s32 2, %v5984_v0 }
 0x11d   :  { %2765 = vmatpush1.bf16.msra.mxu0 %v5181_v36  ;;  %2851 = vmatpush1.bf16.msra.mxu1 %v5184_v5  ;;  %v720_v36 = vld [vmem:[%s6077_s3] sm:$0xf]  ;;  %v5996_v5 = vsub.s32 1, %v5984_v0 }
 0x11e   :  { %2766 = vmatprep.subr.bf16.mxu0 %v5189_v7  ;;  %2852 = vmatprep.subr.bf16.mxu1 %v5192_v9  ;;  %v5999_v7 = vsub.s32 3, %v5984_v0  ;;  %v725_v9 = vrot.slane %v720_v36, %v5987_v2  ;;  %v733_v41 = vrot.slane %v720_v36, %v5990_v4 }
 0x121   :  { %2767 = vmatpush1.bf16.msra.mxu0 %v5187_v11  ;;  %2853 = vmatpush1.bf16.msra.mxu1 %v5190_v47  ;;  %v729_v11 = vrot.slane %v720_v36, %v5996_v5  ;;  %v737_v47 = vrot.slane %v720_v36, %v5999_v7  ;;  %v5315_v36 = vld [vmem:[#allocation4 + $0x2e4] ss:$16 sps:$4 sm:$0xff]  }
 0x122   :  { %2768 = vmatprep.subr.bf16.mxu0 %v5195_v46  ;;  %2854 = vmatprep.subr.bf16.mxu1 %v5198_v51 }
 0x125   :  { %2769 = vmatpush1.bf16.msra.mxu0 %v5193_v45  ;;  %2855 = vmatpush1.bf16.msra.mxu1 %v5196_v12 }
 0x126   :  { %2770 = vmatprep.subr.bf16.mxu0 %v5201_v61  ;;  %2856 = vmatprep.subr.bf16.mxu1 %v5204_v53 }
 0x129   :  { %2771 = vmatpush1.bf16.msra.mxu0 %v5199_v62  ;;  %2857 = vmatpush1.bf16.msra.mxu1 %v5202_v31 }
 0x12a   :  { %2772 = vmatprep.subr.bf16.mxu0 %v5207_v13  ;;  %2858 = vmatprep.subr.bf16.mxu1 %v5210_v58 }
 0x12d   :  { %2773 = vmatpush1.bf16.msra.mxu0 %v5205_v14  ;;  %2859 = vmatpush1.bf16.msra.mxu1 %v5208_v15 }
 0x12e   :  { %2774 = vmatprep.subr.bf16.mxu0 %v5213_v3  ;;  %2860 = vmatprep.subr.bf16.mxu1 %v5216_v6 }
 0x131   :  { %2775 = vmatpush1.bf16.msra.mxu0 %v5211_v17  ;;  %2861 = vmatpush1.bf16.msra.mxu1 %v5214_v18 }
 0x132   :  { %2776 = vmatprep.subr.bf16.mxu0 %v5219_v8  ;;  %2862 = vmatprep.subr.bf16.mxu1 %v5222_v19 }
 0x135   :  { %2777 = vmatpush1.bf16.msra.mxu0 %v5217_v42  ;;  %2863 = vmatpush1.bf16.msra.mxu1 %v5220_v21 }
 0x136   :  { %2778 = vmatprep.subr.bf16.mxu0 %v5225_v22  ;;  %2864 = vmatprep.subr.bf16.mxu1 %v5228_v23 }
 0x139   :  { %2779 = vmatpush1.bf16.msra.mxu0 %v5223_v10  ;;  %2865 = vmatpush1.bf16.msra.mxu1 %v5226_v24 }
 0x13a   :  { %2780 = vmatprep.subr.bf16.mxu0 %v5231_v25  ;;  %2866 = vmatprep.subr.bf16.mxu1 %v5234_v16 }
 0x13d   :  { %2781 = vmatpush1.bf16.msra.mxu0 %v5229_v43  ;;  %2867 = vmatpush1.bf16.msra.mxu1 %v5232_v26 }
 0x13e   :  { %2782 = vmatprep.subr.bf16.mxu0 %v5237_v20  ;;  %2868 = vmatprep.subr.bf16.mxu1 %v5240_v28  ;;  %v5271_v20 = vld [vmem:[#allocation4 + $0x200] ss:$16 sps:$4 sm:$0xff]   ;;  %v5274_v28 = vld [vmem:[#allocation4 + $0x208] ss:$16 sps:$4 sm:$0xff]  }
 0x141   :  { %2783 = vmatpush1.bf16.msra.mxu0 %v5235_v29  ;;  %2869 = vmatpush1.bf16.msra.mxu1 %v5238_v30  ;;  %v5279_v29 = vld [vmem:[#allocation4 + $0x224] ss:$16 sps:$4 sm:$0xff]   ;;  %v5282_v30 = vld [vmem:[#allocation4 + $0x22c] ss:$16 sps:$4 sm:$0xff]  }
 0x142   :  { %2784 = vmatprep.subr.bf16.mxu0 %v5243_v32  ;;  %2870 = vmatprep.subr.bf16.mxu1 %v5246_v33  ;;  %v5277_v32 = vld [vmem:[#allocation4 + $0x220] ss:$16 sps:$4 sm:$0xff]   ;;  %v5280_v33 = vld [vmem:[#allocation4 + $0x228] ss:$16 sps:$4 sm:$0xff]  }
 0x145   :  { %2785 = vmatpush1.bf16.msra.mxu0 %v5241_v34  ;;  %2871 = vmatpush1.bf16.msra.mxu1 %v5244_v35  ;;  %v5285_v34 = vld [vmem:[#allocation4 + $0x244] ss:$16 sps:$4 sm:$0xff]   ;;  %v5288_v35 = vld [vmem:[#allocation4 + $0x24c] ss:$16 sps:$4 sm:$0xff]  }
 0x146   :  { %2786 = vmatprep.subr.bf16.mxu0 %v5249_v1  ;;  %2872 = vmatprep.subr.bf16.mxu1 %v5252_v37  ;;  %v5283_v1 = vld [vmem:[#allocation4 + $0x240] ss:$16 sps:$4 sm:$0xff]   ;;  %v5286_v37 = vld [vmem:[#allocation4 + $0x248] ss:$16 sps:$4 sm:$0xff]  }
 0x149   :  { %2787 = vmatpush1.bf16.msra.mxu0 %v5247_v38  ;;  %2873 = vmatpush1.bf16.msra.mxu1 %v5250_v39  ;;  %v5291_v38 = vld [vmem:[#allocation4 + $0x264] ss:$16 sps:$4 sm:$0xff]   ;;  %v5294_v39 = vld [vmem:[#allocation4 + $0x26c] ss:$16 sps:$4 sm:$0xff]  }
 0x14a   :  { %2788 = vmatprep.subr.bf16.mxu0 %v5255_v40  ;;  %2874 = vmatprep.subr.bf16.mxu1 %v5258_v56  ;;  %v5289_v40 = vld [vmem:[#allocation4 + $0x260] ss:$16 sps:$4 sm:$0xff]   ;;  %v5292_v56 = vld [vmem:[#allocation4 + $0x268] ss:$16 sps:$4 sm:$0xff]  }
 0x14d   :  { %2789 = vmatpush1.bf16.msra.mxu0 %v5253_v57  ;;  %2875 = vmatpush1.bf16.msra.mxu1 %v5256_v44  ;;  %v5297_v57 = vld [vmem:[#allocation4 + $0x284] ss:$16 sps:$4 sm:$0xff]   ;;  %v5300_v44 = vld [vmem:[#allocation4 + $0x28c] ss:$16 sps:$4 sm:$0xff]  }
 0x14e   :  { %2790 = vmatprep.subr.bf16.mxu0 %v5261_v48  ;;  %2876 = vmatprep.subr.bf16.mxu1 %v5264_v27  ;;  %v5295_v48 = vld [vmem:[#allocation4 + $0x280] ss:$16 sps:$4 sm:$0xff]   ;;  %v5298_v27 = vld [vmem:[#allocation4 + $0x288] ss:$16 sps:$4 sm:$0xff]  }
 0x151   :  { %2791 = vmatpush1.bf16.msra.mxu0 %v5259_v49  ;;  %2877 = vmatpush1.bf16.msra.mxu1 %v5262_v50  ;;  %v5303_v49 = vld [vmem:[#allocation4 + $0x2a4] ss:$16 sps:$4 sm:$0xff]   ;;  %v5306_v50 = vld [vmem:[#allocation4 + $0x2ac] ss:$16 sps:$4 sm:$0xff]  }
 0x152   :  { %2792 = vmatprep.subr.bf16.mxu0 %v5267_v52  ;;  %2878 = vmatprep.subr.bf16.mxu1 %v5270_v54  ;;  %v5301_v52 = vld [vmem:[#allocation4 + $0x2a0] ss:$16 sps:$4 sm:$0xff]   ;;  %v5304_v54 = vld [vmem:[#allocation4 + $0x2a8] ss:$16 sps:$4 sm:$0xff]  }
 0x155   :  { %2793 = vmatpush1.bf16.msra.mxu0 %v5265_v55  ;;  %2879 = vmatpush1.bf16.msra.mxu1 %v5268_v59  ;;  %v5309_v55 = vld [vmem:[#allocation4 + $0x2c4] ss:$16 sps:$4 sm:$0xff]   ;;  %v5312_v59 = vld [vmem:[#allocation4 + $0x2cc] ss:$16 sps:$4 sm:$0xff]  }
 0x156   :  { %2805 = vmatprep.subr.bf16.mxu0 %v5273_v60  ;;  %2891 = vmatprep.subr.bf16.mxu1 %v5276_v63  ;;  %v5307_v60 = vld [vmem:[#allocation4 + $0x2c0] ss:$16 sps:$4 sm:$0xff]   ;;  %v5310_v63 = vld [vmem:[#allocation4 + $0x2c8] ss:$16 sps:$4 sm:$0xff]  }
 0x1eb   :  { %v1822_v46 = vpop.f32.mrb[0].mxu0  ;;  %v1951_v51 = vpop.f32.mrb[0].mxu1 }
 0x1ec   :  { %v4808_v45 = vadd.f32 %v1822_v46, %v725_v9  ;;  %v4812_v12 = vadd.f32 %v1951_v51, %v733_v41  ;;  %v1824_v61 = vpop.f32.mrb[1].mxu0  ;;  %v1953_v53 = vpop.f32.mrb[1].mxu1  ;;  %v5324_v46 = vld [vmem:[#allocation4 + $0x30c] ss:$16 sps:$4 sm:$0xff]   ;;  %v5319_v51 = vld [vmem:[#allocation4 + $0x300] ss:$16 sps:$4 sm:$0xff]  }
 0x1ed   :  { %v4809_v62 = vadd.f32 %v1824_v61, %v729_v11  ;;  %v4813_v31 = vadd.f32 %v1953_v53, %v737_v47  ;;  %v1826_v13 = vpop.f32.mrb[2].mxu0  ;;  %v1955_v58 = vpop.f32.mrb[2].mxu1  ;;  %v5330_v61 = vld [vmem:[#allocation4 + $0x32c] ss:$16 sps:$4 sm:$0xff]   ;;  %v5325_v53 = vld [vmem:[#allocation4 + $0x320] ss:$16 sps:$4 sm:$0xff]  }
 0x1ee   :  { %v4810_v14 = vadd.f32 %v1826_v13, %v725_v9  ;;  %v4814_v15 = vadd.f32 %v1955_v58, %v733_v41  ;;  %v1828_v3 = vpop.f32.mrb[3].mxu0  ;;  %v1957_v6 = vpop.f32.mrb[3].mxu1  ;;  %v1960_v8 = vmax.f32 %v4808_v45, 0.0  ;;  %v1962_v19 = vmax.f32 %v4812_v12, 0.0  ;;  %v5318_v9 = vld [vmem:[#allocation4 + $0x2ec] ss:$16 sps:$4 sm:$0xff]  }
 0x1ef   :  { %v4811_v17 = vadd.f32 %v1828_v3, %v729_v11  ;;  %v4815_v18 = vadd.f32 %v1957_v6, %v737_v47  ;;  %v1961_v22 = vmax.f32 %v4809_v62, 0.0  ;;  %v1963_v23 = vmax.f32 %v4813_v31, 0.0  ;;  %v5313_v41 = vld [vmem:[#allocation4 + $0x2e0] ss:$16 sps:$4 sm:$0xff]   ;;  %v5316_v11 = vld [vmem:[#allocation4 + $0x2e8] ss:$16 sps:$4 sm:$0xff]  }
 0x1f0   :  { %v1964_v42 = vmax.f32 %v4810_v14, 0.0  ;;  %v1966_v21 = vmax.f32 %v4814_v15, 0.0  ;;  %v5321_v47 = vld [vmem:[#allocation4 + $0x304] ss:$16 sps:$4 sm:$0xff]   ;;  %v5322_v45 = vld [vmem:[#allocation4 + $0x308] ss:$16 sps:$4 sm:$0xff]  }
 0x1f1   :  { %v1965_v10 = vmax.f32 %v4811_v17, 0.0  ;;  %v1967_v24 = vmax.f32 %v4815_v18, 0.0  ;;  %v5327_v12 = vld [vmem:[#allocation4 + $0x324] ss:$16 sps:$4 sm:$0xff]   ;;  %v5328_v62 = vld [vmem:[#allocation4 + $0x328] ss:$16 sps:$4 sm:$0xff]  }
 0x1f2   :  { %v1968_v25 = vpack.c.bf16 %v1964_v42, %v1960_v8  ;;  %v6005_v16 = vpack.c.bf16 %v1966_v21, %v1962_v19  ;;  %v5333_v31 = vld [vmem:[#allocation4 + $0x344] ss:$16 sps:$4 sm:$0xff]   ;;  %v5336_v13 = vld [vmem:[#allocation4 + $0x34c] ss:$16 sps:$4 sm:$0xff]   ;;  %v5331_v58 = vld [vmem:[#allocation4 + $0x340] ss:$16 sps:$4 sm:$0xff]  }
 0x1f3   :  { %v1969_v43 = vpack.c.bf16 %v1965_v10, %v1961_v22  ;;  %v1971_v26 = vpack.c.bf16 %v1967_v24, %v1963_v23  ;;  %v5334_v14 = vld [vmem:[#allocation4 + $0x348] ss:$16 sps:$4 sm:$0xff]   ;;  %v5339_v15 = vld [vmem:[#allocation4 + $0x364] ss:$16 sps:$4 sm:$0xff]   ;;  %v5342_v3 = vld [vmem:[#allocation4 + $0x36c] ss:$16 sps:$4 sm:$0xff]  }
 0x1f4   :  { %v5337_v6 = vld [vmem:[#allocation4 + $0x360] ss:$16 sps:$4 sm:$0xff]   ;;  %v5340_v17 = vld [vmem:[#allocation4 + $0x368] ss:$16 sps:$4 sm:$0xff]   ;;  %v5345_v18 = vld [vmem:[#allocation4 + $0x384] ss:$16 sps:$4 sm:$0xff]  }
 0x1f5   :  { %2794 = vmatprep.mubr.bf16.mxu0 %v1969_v43  ;;  %2880 = vmatprep.mubr.bf16.mxu1 %v1969_v43  ;;  %v5348_v8 = vld [vmem:[#allocation4 + $0x38c] ss:$16 sps:$4 sm:$0xff]   ;;  %v5343_v19 = vld [vmem:[#allocation4 + $0x380] ss:$16 sps:$4 sm:$0xff]   ;;  %v5346_v42 = vld [vmem:[#allocation4 + $0x388] ss:$16 sps:$4 sm:$0xff]  }
 0x1f6   :  { %2795 = vmatmul.mubr.bf16.vlgmr.msra.gmra.mrb[4].mxu0 %v1968_v25  ;;  %2881 = vmatmul.mubr.bf16.vlgmr.msra.gmra.mrb[4].mxu1 %v1968_v25  ;;  %v5351_v21 = vld [vmem:[#allocation4 + $0x3a4] ss:$16 sps:$4 sm:$0xff]   ;;  %v5354_v22 = vld [vmem:[#allocation4 + $0x3ac] ss:$16 sps:$4 sm:$0xff]   ;;  %v5349_v23 = vld [vmem:[#allocation4 + $0x3a0] ss:$16 sps:$4 sm:$0xff]  }
 0x1f7   :  { %2806 = vmatpush1.bf16.msra.mxu0 %v5271_v20  ;;  %2892 = vmatpush1.bf16.msra.mxu1 %v5274_v28  ;;  %v5352_v10 = vld [vmem:[#allocation4 + $0x3a8] ss:$16 sps:$4 sm:$0xff]   ;;  %v5357_v24 = vld [vmem:[#allocation4 + $0x3c4] ss:$16 sps:$4 sm:$0xff]   ;;  %v5360_v25 = vld [vmem:[#allocation4 + $0x3cc] ss:$16 sps:$4 sm:$0xff]  }
 0x1f8   :  { %2837 = vmatprep.mubr.bf16.mxu0 %v1971_v26  ;;  %2923 = vmatprep.mubr.bf16.mxu1 %v1971_v26  ;;  %v5355_v43 = vld [vmem:[#allocation4 + $0x3c0] ss:$16 sps:$4 sm:$0xff]   ;;  %v5358_v26 = vld [vmem:[#allocation4 + $0x3c8] ss:$16 sps:$4 sm:$0xff]   ;;  %v5363_v20 = vld [vmem:[#allocation4 + $0x3e4] ss:$16 sps:$4 sm:$0xff]  }
 0x1f9   :  { %2807 = vmatprep.subr.bf16.mxu0 %v5279_v29  ;;  %2893 = vmatprep.subr.bf16.mxu1 %v5282_v30  ;;  %v5366_v28 = vld [vmem:[#allocation4 + $0x3ec] ss:$16 sps:$4 sm:$0xff]   ;;  %v5361_v29 = vld [vmem:[#allocation4 + $0x3e0] ss:$16 sps:$4 sm:$0xff]   ;;  %v5364_v30 = vld [vmem:[#allocation4 + $0x3e8] ss:$16 sps:$4 sm:$0xff]  }
 0x1fb   :  { %2808 = vmatpush1.bf16.msra.mxu0 %v5277_v32  ;;  %2894 = vmatpush1.bf16.msra.mxu1 %v5280_v33  ;;  %v5369_v32 = vld [vmem:[#allocation6 + $0x4] ss:$20 sps:$4 sm:$0xff]   ;;  %v5372_v33 = vld [vmem:[#allocation6 + $0xc] ss:$20 sps:$4 sm:$0xff]  }
 0x1fc   :  { %2809 = vmatprep.subr.bf16.mxu0 %v5285_v34  ;;  %2895 = vmatprep.subr.bf16.mxu1 %v5288_v35  ;;  %v5367_v34 = vld [vmem:[#allocation6] ss:$20 sps:$4 sm:$0xff]   ;;  %v5370_v35 = vld [vmem:[#allocation6 + $0x8] ss:$20 sps:$4 sm:$0xff]  }
 0x1ff   :  { %2810 = vmatpush1.bf16.msra.mxu0 %v5283_v1  ;;  %2896 = vmatpush1.bf16.msra.mxu1 %v5286_v37  ;;  %v5375_v1 = vld [vmem:[#allocation6 + $0x2c] ss:$20 sps:$4 sm:$0xff]   ;;  %v5378_v37 = vld [vmem:[#allocation6 + $0x34] ss:$20 sps:$4 sm:$0xff]  }
 0x200   :  { %2811 = vmatprep.subr.bf16.mxu0 %v5291_v38  ;;  %2897 = vmatprep.subr.bf16.mxu1 %v5294_v39  ;;  %v5373_v38 = vld [vmem:[#allocation6 + $0x28] ss:$20 sps:$4 sm:$0xff]   ;;  %v5376_v39 = vld [vmem:[#allocation6 + $0x30] ss:$20 sps:$4 sm:$0xff]  }
 0x203   :  { %2812 = vmatpush1.bf16.msra.mxu0 %v5289_v40  ;;  %2898 = vmatpush1.bf16.msra.mxu1 %v5292_v56  ;;  %v5381_v40 = vld [vmem:[#allocation6 + $0x54] ss:$20 sps:$4 sm:$0xff]   ;;  %v5384_v56 = vld [vmem:[#allocation6 + $0x5c] ss:$20 sps:$4 sm:$0xff]  }
 0x204   :  { %2813 = vmatprep.subr.bf16.mxu0 %v5297_v57  ;;  %2899 = vmatprep.subr.bf16.mxu1 %v5300_v44  ;;  %v5379_v57 = vld [vmem:[#allocation6 + $0x50] ss:$20 sps:$4 sm:$0xff]   ;;  %v5382_v44 = vld [vmem:[#allocation6 + $0x58] ss:$20 sps:$4 sm:$0xff]  }
 0x207   :  { %2814 = vmatpush1.bf16.msra.mxu0 %v5295_v48  ;;  %2900 = vmatpush1.bf16.msra.mxu1 %v5298_v27  ;;  %v5387_v48 = vld [vmem:[#allocation6 + $0x7c] ss:$20 sps:$4 sm:$0xff]   ;;  %v5390_v27 = vld [vmem:[#allocation6 + $0x84] ss:$20 sps:$4 sm:$0xff]  }
 0x208   :  { %2815 = vmatprep.subr.bf16.mxu0 %v5303_v49  ;;  %2901 = vmatprep.subr.bf16.mxu1 %v5306_v50  ;;  %v5385_v49 = vld [vmem:[#allocation6 + $0x78] ss:$20 sps:$4 sm:$0xff]  }
 0x209   :  { %v5393_v50 = vld [vmem:[#allocation6 + $0xa4] ss:$20 sps:$4 sm:$0xff]  }
 0x20b   :  { %2816 = vmatpush1.bf16.msra.mxu0 %v5301_v52  ;;  %2902 = vmatpush1.bf16.msra.mxu1 %v5304_v54  ;;  %v5396_v52 = vld [vmem:[#allocation6 + $0xac] ss:$20 sps:$4 sm:$0xff]  }
 0x20c   :  { %2817 = vmatprep.subr.bf16.mxu0 %v5309_v55  ;;  %2903 = vmatprep.subr.bf16.mxu1 %v5312_v59  ;;  %v5391_v54 = vld [vmem:[#allocation6 + $0xa0] ss:$20 sps:$4 sm:$0xff]   ;;  %v5394_v55 = vld [vmem:[#allocation6 + $0xa8] ss:$20 sps:$4 sm:$0xff]  }
 0x20d   :  { %v5399_v59 = vld [vmem:[#allocation6 + $0xcc] ss:$20 sps:$4 sm:$0xff]  }
 0x20f   :  { %2818 = vmatpush1.bf16.msra.mxu0 %v5307_v60  ;;  %2904 = vmatpush1.bf16.msra.mxu1 %v5310_v63  ;;  %v5402_v60 = vld [vmem:[#allocation6 + $0xd4] ss:$20 sps:$4 sm:$0xff]  }
 0x210   :  { %2819 = vmatprep.subr.bf16.mxu0 %v5315_v36  ;;  %2905 = vmatprep.subr.bf16.mxu1 %v5318_v9  ;;  %v5397_v63 = vld [vmem:[#allocation6 + $0xc8] ss:$20 sps:$4 sm:$0xff]   ;;  %v5400_v36 = vld [vmem:[#allocation6 + $0xd0] ss:$20 sps:$4 sm:$0xff]  }
 0x211   :  { %v5405_v9 = vld [vmem:[#allocation6 + $0xf4] ss:$20 sps:$4 sm:$0xff]  }
 0x213   :  { %2820 = vmatpush1.bf16.msra.mxu0 %v5313_v41  ;;  %2906 = vmatpush1.bf16.msra.mxu1 %v5316_v11  ;;  %v5408_v41 = vld [vmem:[#allocation6 + $0xfc] ss:$20 sps:$4 sm:$0xff]  }
 0x214   :  { %2821 = vmatprep.subr.bf16.mxu0 %v5321_v47  ;;  %2907 = vmatprep.subr.bf16.mxu1 %v5324_v46  ;;  %v5403_v11 = vld [vmem:[#allocation6 + $0xf0] ss:$20 sps:$4 sm:$0xff]   ;;  %v5406_v47 = vld [vmem:[#allocation6 + $0xf8] ss:$20 sps:$4 sm:$0xff]  }
 0x215   :  { %v5411_v46 = vld [vmem:[#allocation6 + $0x11c] ss:$20 sps:$4 sm:$0xff]  }
 0x217   :  { %2822 = vmatpush1.bf16.msra.mxu0 %v5319_v51  ;;  %2908 = vmatpush1.bf16.msra.mxu1 %v5322_v45  ;;  %v5414_v51 = vld [vmem:[#allocation6 + $0x124] ss:$20 sps:$4 sm:$0xff]  }
 0x218   :  { %2823 = vmatprep.subr.bf16.mxu0 %v5327_v12  ;;  %2909 = vmatprep.subr.bf16.mxu1 %v5330_v61  ;;  %v5409_v45 = vld [vmem:[#allocation6 + $0x118] ss:$20 sps:$4 sm:$0xff]   ;;  %v5412_v12 = vld [vmem:[#allocation6 + $0x120] ss:$20 sps:$4 sm:$0xff]  }
 0x219   :  { %v5417_v61 = vld [vmem:[#allocation6 + $0x144] ss:$20 sps:$4 sm:$0xff]  }
 0x21b   :  { %2824 = vmatpush1.bf16.msra.mxu0 %v5325_v53  ;;  %2910 = vmatpush1.bf16.msra.mxu1 %v5328_v62  ;;  %v5420_v53 = vld [vmem:[#allocation6 + $0x14c] ss:$20 sps:$4 sm:$0xff]  }
 0x21c   :  { %2825 = vmatprep.subr.bf16.mxu0 %v5333_v31  ;;  %2911 = vmatprep.subr.bf16.mxu1 %v5336_v13  ;;  %v5415_v62 = vld [vmem:[#allocation6 + $0x140] ss:$20 sps:$4 sm:$0xff]   ;;  %v5418_v31 = vld [vmem:[#allocation6 + $0x148] ss:$20 sps:$4 sm:$0xff]  }
 0x21d   :  { %v5423_v13 = vld [vmem:[#allocation6 + $0x16c] ss:$20 sps:$4 sm:$0xff]  }
 0x21f   :  { %2826 = vmatpush1.bf16.msra.mxu0 %v5331_v58  ;;  %2912 = vmatpush1.bf16.msra.mxu1 %v5334_v14  ;;  %v5426_v58 = vld [vmem:[#allocation6 + $0x174] ss:$20 sps:$4 sm:$0xff]  }
 0x220   :  { %2827 = vmatprep.subr.bf16.mxu0 %v5339_v15  ;;  %2913 = vmatprep.subr.bf16.mxu1 %v5342_v3  ;;  %v5421_v14 = vld [vmem:[#allocation6 + $0x168] ss:$20 sps:$4 sm:$0xff]   ;;  %v5424_v15 = vld [vmem:[#allocation6 + $0x170] ss:$20 sps:$4 sm:$0xff]  }
 0x221   :  { %v5429_v3 = vld [vmem:[#allocation6 + $0x194] ss:$20 sps:$4 sm:$0xff]  }
 0x223   :  { %2828 = vmatpush1.bf16.msra.mxu0 %v5337_v6  ;;  %2914 = vmatpush1.bf16.msra.mxu1 %v5340_v17  ;;  %v5432_v6 = vld [vmem:[#allocation6 + $0x19c] ss:$20 sps:$4 sm:$0xff]  }
 0x224   :  { %2829 = vmatprep.subr.bf16.mxu0 %v5345_v18  ;;  %2915 = vmatprep.subr.bf16.mxu1 %v5348_v8  ;;  %v5427_v17 = vld [vmem:[#allocation6 + $0x190] ss:$20 sps:$4 sm:$0xff]   ;;  %v5430_v18 = vld [vmem:[#allocation6 + $0x198] ss:$20 sps:$4 sm:$0xff]  }
 0x225   :  { %v5435_v8 = vld [vmem:[#allocation6 + $0x1bc] ss:$20 sps:$4 sm:$0xff]  }
 0x227   :  { %2830 = vmatpush1.bf16.msra.mxu0 %v5343_v19  ;;  %2916 = vmatpush1.bf16.msra.mxu1 %v5346_v42  ;;  %v5438_v19 = vld [vmem:[#allocation6 + $0x1c4] ss:$20 sps:$4 sm:$0xff]  }
 0x228   :  { %2831 = vmatprep.subr.bf16.mxu0 %v5351_v21  ;;  %2917 = vmatprep.subr.bf16.mxu1 %v5354_v22  ;;  %v5433_v42 = vld [vmem:[#allocation6 + $0x1b8] ss:$20 sps:$4 sm:$0xff]   ;;  %v5436_v21 = vld [vmem:[#allocation6 + $0x1c0] ss:$20 sps:$4 sm:$0xff]  }
 0x229   :  { %v5441_v22 = vld [vmem:[#allocation6 + $0x1e4] ss:$20 sps:$4 sm:$0xff]  }
 0x22b   :  { %2832 = vmatpush1.bf16.msra.mxu0 %v5349_v23  ;;  %2918 = vmatpush1.bf16.msra.mxu1 %v5352_v10  ;;  %v5444_v23 = vld [vmem:[#allocation6 + $0x1ec] ss:$20 sps:$4 sm:$0xff]  }
 0x22c   :  { %2833 = vmatprep.subr.bf16.mxu0 %v5357_v24  ;;  %2919 = vmatprep.subr.bf16.mxu1 %v5360_v25  ;;  %v5439_v10 = vld [vmem:[#allocation6 + $0x1e0] ss:$20 sps:$4 sm:$0xff]   ;;  %v5442_v24 = vld [vmem:[#allocation6 + $0x1e8] ss:$20 sps:$4 sm:$0xff]  }
 0x22d   :  { %v5447_v25 = vld [vmem:[#allocation6 + $0x20c] ss:$20 sps:$4 sm:$0xff]  }
 0x22f   :  { %2834 = vmatpush1.bf16.msra.mxu0 %v5355_v43  ;;  %2920 = vmatpush1.bf16.msra.mxu1 %v5358_v26  ;;  %v5450_v43 = vld [vmem:[#allocation6 + $0x214] ss:$20 sps:$4 sm:$0xff]  }
 0x230   :  { %2835 = vmatprep.subr.bf16.mxu0 %v5363_v20  ;;  %2921 = vmatprep.subr.bf16.mxu1 %v5366_v28  ;;  %v5445_v26 = vld [vmem:[#allocation6 + $0x208] ss:$20 sps:$4 sm:$0xff]   ;;  %v5448_v20 = vld [vmem:[#allocation6 + $0x210] ss:$20 sps:$4 sm:$0xff]  }
 0x231   :  { %v5453_v28 = vld [vmem:[#allocation6 + $0x234] ss:$20 sps:$4 sm:$0xff]  }
 0x233   :  { %2836 = vmatpush1.bf16.msra.mxu0 %v5361_v29  ;;  %2922 = vmatpush1.bf16.msra.mxu1 %v5364_v30  ;;  %v5456_v29 = vld [vmem:[#allocation6 + $0x23c] ss:$20 sps:$4 sm:$0xff]  }
 0x234   :  { %3997 = vmatprep.subr.bf16.mxu0 %v5369_v32  ;;  %4083 = vmatprep.subr.bf16.mxu1 %v5372_v33  ;;  %v5451_v30 = vld [vmem:[#allocation6 + $0x230] ss:$20 sps:$4 sm:$0xff]   ;;  %v5454_v32 = vld [vmem:[#allocation6 + $0x238] ss:$20 sps:$4 sm:$0xff]  }
 0x235   :  { %v5459_v33 = vld [vmem:[#allocation6 + $0x25c] ss:$20 sps:$4 sm:$0xff]  }
 0x236   :  { %2838 = vmatmul.mubr.bf16.vlgmr.msra.gmra.mrb[4].mxu0 %v6005_v16  ;;  %2924 = vmatmul.mubr.bf16.vlgmr.msra.gmra.mrb[4].mxu1 %v6005_v16  ;;  %v5388_v16 = vld [vmem:[#allocation6 + $0x80] ss:$20 sps:$4 sm:$0xff]  }
 0x237   :  { %3998 = vmatpush1.bf16.msra.mxu0 %v5367_v34  ;;  %4084 = vmatpush1.bf16.msra.mxu1 %v5370_v35  ;;  %v5462_v34 = vld [vmem:[#allocation6 + $0x264] ss:$20 sps:$4 sm:$0xff]  }
 0x238   :  { %3999 = vmatprep.subr.bf16.mxu0 %v5375_v1  ;;  %4085 = vmatprep.subr.bf16.mxu1 %v5378_v37  ;;  %v5457_v35 = vld [vmem:[#allocation6 + $0x258] ss:$20 sps:$4 sm:$0xff]   ;;  %v5460_v1 = vld [vmem:[#allocation6 + $0x260] ss:$20 sps:$4 sm:$0xff]  }
 0x239   :  { %v5465_v37 = vld [vmem:[#allocation6 + $0x284] ss:$20 sps:$4 sm:$0xff]  }
 0x23b   :  { %4000 = vmatpush1.bf16.msra.mxu0 %v5373_v38  ;;  %4086 = vmatpush1.bf16.msra.mxu1 %v5376_v39  ;;  %v5468_v38 = vld [vmem:[#allocation6 + $0x28c] ss:$20 sps:$4 sm:$0xff]  }
 0x23c   :  { %4001 = vmatprep.subr.bf16.mxu0 %v5381_v40  ;;  %4087 = vmatprep.subr.bf16.mxu1 %v5384_v56  ;;  %v2100_v39 = vld [vmem:[%s6079_s5] sm:$0xf] }
 0x23d   :  { %v2105_v40 = vrot.slane %v2100_v39, %v5987_v2  ;;  %v2113_v56 = vrot.slane %v2100_v39, %v5990_v4 }
 0x23f   :  { %4002 = vmatpush1.bf16.msra.mxu0 %v5379_v57  ;;  %4088 = vmatpush1.bf16.msra.mxu1 %v5382_v44  ;;  %v2109_v57 = vrot.slane %v2100_v39, %v5996_v5  ;;  %v2117_v44 = vrot.slane %v2100_v39, %v5999_v7  ;;  %v5507_v39 = vld [vmem:[#allocation6 + $0x39c] ss:$20 sps:$4 sm:$0xff]  }
 0x240   :  { %4003 = vmatprep.subr.bf16.mxu0 %v5387_v48  ;;  %4089 = vmatprep.subr.bf16.mxu1 %v5390_v27 }
 0x243   :  { %4004 = vmatpush1.bf16.msra.mxu0 %v5385_v49  ;;  %4090 = vmatpush1.bf16.msra.mxu1 %v5388_v16 }
 0x244   :  { %4005 = vmatprep.subr.bf16.mxu0 %v5393_v50  ;;  %4091 = vmatprep.subr.bf16.mxu1 %v5396_v52 }
 0x247   :  { %4006 = vmatpush1.bf16.msra.mxu0 %v5391_v54  ;;  %4092 = vmatpush1.bf16.msra.mxu1 %v5394_v55 }
 0x248   :  { %4007 = vmatprep.subr.bf16.mxu0 %v5399_v59  ;;  %4093 = vmatprep.subr.bf16.mxu1 %v5402_v60 }
 0x24b   :  { %4008 = vmatpush1.bf16.msra.mxu0 %v5397_v63  ;;  %4094 = vmatpush1.bf16.msra.mxu1 %v5400_v36 }
 0x24c   :  { %4009 = vmatprep.subr.bf16.mxu0 %v5405_v9  ;;  %4095 = vmatprep.subr.bf16.mxu1 %v5408_v41 }
 0x24f   :  { %4010 = vmatpush1.bf16.msra.mxu0 %v5403_v11  ;;  %4096 = vmatpush1.bf16.msra.mxu1 %v5406_v47 }
 0x250   :  { %4011 = vmatprep.subr.bf16.mxu0 %v5411_v46  ;;  %4097 = vmatprep.subr.bf16.mxu1 %v5414_v51 }
 0x253   :  { %4012 = vmatpush1.bf16.msra.mxu0 %v5409_v45  ;;  %4098 = vmatpush1.bf16.msra.mxu1 %v5412_v12 }
 0x254   :  { %4013 = vmatprep.subr.bf16.mxu0 %v5417_v61  ;;  %4099 = vmatprep.subr.bf16.mxu1 %v5420_v53 }
 0x257   :  { %4014 = vmatpush1.bf16.msra.mxu0 %v5415_v62  ;;  %4100 = vmatpush1.bf16.msra.mxu1 %v5418_v31 }
 0x258   :  { %4015 = vmatprep.subr.bf16.mxu0 %v5423_v13  ;;  %4101 = vmatprep.subr.bf16.mxu1 %v5426_v58 }
 0x25b   :  { %4016 = vmatpush1.bf16.msra.mxu0 %v5421_v14  ;;  %4102 = vmatpush1.bf16.msra.mxu1 %v5424_v15 }
 0x25c   :  { %4017 = vmatprep.subr.bf16.mxu0 %v5429_v3  ;;  %4103 = vmatprep.subr.bf16.mxu1 %v5432_v6  ;;  %v5463_v3 = vld [vmem:[#allocation6 + $0x280] ss:$20 sps:$4 sm:$0xff]   ;;  %v5466_v6 = vld [vmem:[#allocation6 + $0x288] ss:$20 sps:$4 sm:$0xff]  }
 0x25f   :  { %4018 = vmatpush1.bf16.msra.mxu0 %v5427_v17  ;;  %4104 = vmatpush1.bf16.msra.mxu1 %v5430_v18  ;;  %v5471_v17 = vld [vmem:[#allocation6 + $0x2ac] ss:$20 sps:$4 sm:$0xff]   ;;  %v5474_v18 = vld [vmem:[#allocation6 + $0x2b4] ss:$20 sps:$4 sm:$0xff]  }
 0x260   :  { %4019 = vmatprep.subr.bf16.mxu0 %v5435_v8  ;;  %4105 = vmatprep.subr.bf16.mxu1 %v5438_v19  ;;  %v5469_v8 = vld [vmem:[#allocation6 + $0x2a8] ss:$20 sps:$4 sm:$0xff]   ;;  %v5472_v19 = vld [vmem:[#allocation6 + $0x2b0] ss:$20 sps:$4 sm:$0xff]  }
 0x263   :  { %4020 = vmatpush1.bf16.msra.mxu0 %v5433_v42  ;;  %4106 = vmatpush1.bf16.msra.mxu1 %v5436_v21  ;;  %v5477_v42 = vld [vmem:[#allocation6 + $0x2d4] ss:$20 sps:$4 sm:$0xff]   ;;  %v5480_v21 = vld [vmem:[#allocation6 + $0x2dc] ss:$20 sps:$4 sm:$0xff]  }
 0x264   :  { %4021 = vmatprep.subr.bf16.mxu0 %v5441_v22  ;;  %4107 = vmatprep.subr.bf16.mxu1 %v5444_v23  ;;  %v5475_v22 = vld [vmem:[#allocation6 + $0x2d0] ss:$20 sps:$4 sm:$0xff]   ;;  %v5478_v23 = vld [vmem:[#allocation6 + $0x2d8] ss:$20 sps:$4 sm:$0xff]  }
 0x267   :  { %4022 = vmatpush1.bf16.msra.mxu0 %v5439_v10  ;;  %4108 = vmatpush1.bf16.msra.mxu1 %v5442_v24  ;;  %v5483_v10 = vld [vmem:[#allocation6 + $0x2fc] ss:$20 sps:$4 sm:$0xff]   ;;  %v5486_v24 = vld [vmem:[#allocation6 + $0x304] ss:$20 sps:$4 sm:$0xff]  }
 0x268   :  { %4023 = vmatprep.subr.bf16.mxu0 %v5447_v25  ;;  %4109 = vmatprep.subr.bf16.mxu1 %v5450_v43  ;;  %v5481_v25 = vld [vmem:[#allocation6 + $0x2f8] ss:$20 sps:$4 sm:$0xff]   ;;  %v5484_v43 = vld [vmem:[#allocation6 + $0x300] ss:$20 sps:$4 sm:$0xff]  }
 0x26b   :  { %4024 = vmatpush1.bf16.msra.mxu0 %v5445_v26  ;;  %4110 = vmatpush1.bf16.msra.mxu1 %v5448_v20  ;;  %v5489_v26 = vld [vmem:[#allocation6 + $0x324] ss:$20 sps:$4 sm:$0xff]   ;;  %v5492_v20 = vld [vmem:[#allocation6 + $0x32c] ss:$20 sps:$4 sm:$0xff]  }
 0x26c   :  { %4025 = vmatprep.subr.bf16.mxu0 %v5453_v28  ;;  %4111 = vmatprep.subr.bf16.mxu1 %v5456_v29  ;;  %v5487_v28 = vld [vmem:[#allocation6 + $0x320] ss:$20 sps:$4 sm:$0xff]   ;;  %v5490_v29 = vld [vmem:[#allocation6 + $0x328] ss:$20 sps:$4 sm:$0xff]  }
 0x26f   :  { %4026 = vmatpush1.bf16.msra.mxu0 %v5451_v30  ;;  %4112 = vmatpush1.bf16.msra.mxu1 %v5454_v32  ;;  %v5495_v30 = vld [vmem:[#allocation6 + $0x34c] ss:$20 sps:$4 sm:$0xff]   ;;  %v5498_v32 = vld [vmem:[#allocation6 + $0x354] ss:$20 sps:$4 sm:$0xff]  }
 0x270   :  { %4027 = vmatprep.subr.bf16.mxu0 %v5459_v33  ;;  %4113 = vmatprep.subr.bf16.mxu1 %v5462_v34  ;;  %v5493_v33 = vld [vmem:[#allocation6 + $0x348] ss:$20 sps:$4 sm:$0xff]   ;;  %v5496_v34 = vld [vmem:[#allocation6 + $0x350] ss:$20 sps:$4 sm:$0xff]  }
 0x273   :  { %4028 = vmatpush1.bf16.msra.mxu0 %v5457_v35  ;;  %4114 = vmatpush1.bf16.msra.mxu1 %v5460_v1  ;;  %v5501_v35 = vld [vmem:[#allocation6 + $0x374] ss:$20 sps:$4 sm:$0xff]   ;;  %v5504_v1 = vld [vmem:[#allocation6 + $0x37c] ss:$20 sps:$4 sm:$0xff]  }
 0x274   :  { %4040 = vmatprep.subr.bf16.mxu0 %v5465_v37  ;;  %4126 = vmatprep.subr.bf16.mxu1 %v5468_v38  ;;  %v5499_v37 = vld [vmem:[#allocation6 + $0x370] ss:$20 sps:$4 sm:$0xff]   ;;  %v5502_v38 = vld [vmem:[#allocation6 + $0x378] ss:$20 sps:$4 sm:$0xff]  }
 0x309   :  { %v2839_v48 = vpop.f32.mrb[4].mxu0  ;;  %v2925_v27 = vpop.f32.mrb[4].mxu1 }
 0x30a   :  { %v4816_v49 = vadd.f32 %v2839_v48, %v2105_v40  ;;  %v4820_v16 = vadd.f32 %v2925_v27, %v2113_v56  ;;  %v2841_v50 = vpop.f32.mrb[5].mxu0  ;;  %v2927_v52 = vpop.f32.mrb[5].mxu1  ;;  %v5516_v48 = vld [vmem:[#allocation6 + $0x3cc] ss:$20 sps:$4 sm:$0xff]  }
 0x30b   :  { %v4817_v54 = vadd.f32 %v2841_v50, %v2109_v57  ;;  %v4821_v55 = vadd.f32 %v2927_v52, %v2117_v44  ;;  %v2843_v59 = vpop.f32.mrb[6].mxu0  ;;  %v2929_v60 = vpop.f32.mrb[6].mxu1  ;;  %v5511_v27 = vld [vmem:[#allocation6 + $0x3c0] ss:$20 sps:$4 sm:$0xff]   ;;  %v5517_v52 = vld [vmem:[#allocation6 + $0x3e8] ss:$20 sps:$4 sm:$0xff]  }
 0x30c   :  { %v4818_v63 = vadd.f32 %v2843_v59, %v2105_v40  ;;  %v4822_v36 = vadd.f32 %v2929_v60, %v2113_v56  ;;  %v2845_v9 = vpop.f32.mrb[7].mxu0  ;;  %v2931_v41 = vpop.f32.mrb[7].mxu1  ;;  %v2934_v46 = vmax.f32 %v4816_v49, 0.0  ;;  %v2936_v51 = vmax.f32 %v4820_v16, 0.0  ;;  %v5510_v40 = vld [vmem:[#allocation6 + $0x3a4] ss:$20 sps:$4 sm:$0xff]  }
 0x30d   :  { %v4819_v11 = vadd.f32 %v2845_v9, %v2109_v57  ;;  %v4823_v47 = vadd.f32 %v2931_v41, %v2117_v44  ;;  %v2935_v61 = vmax.f32 %v4817_v54, 0.0  ;;  %v2937_v53 = vmax.f32 %v4821_v55, 0.0  ;;  %v5505_v56 = vld [vmem:[#allocation6 + $0x398] ss:$20 sps:$4 sm:$0xff]   ;;  %v5508_v57 = vld [vmem:[#allocation6 + $0x3a0] ss:$20 sps:$4 sm:$0xff]  }
 0x30e   :  { %v2938_v45 = vmax.f32 %v4818_v63, 0.0  ;;  %v2940_v12 = vmax.f32 %v4822_v36, 0.0  ;;  %v5513_v44 = vld [vmem:[#allocation6 + $0x3c4] ss:$20 sps:$4 sm:$0xff]   ;;  %v5514_v49 = vld [vmem:[#allocation6 + $0x3c8] ss:$20 sps:$4 sm:$0xff]  }
 0x30f   :  { %v2939_v62 = vmax.f32 %v4819_v11, 0.0  ;;  %v2941_v31 = vmax.f32 %v4823_v47, 0.0  ;;  %v5519_v16 = vld [vmem:[#allocation6 + $0x3ec] ss:$20 sps:$4 sm:$0xff]   ;;  %v5522_v50 = vld [vmem:[#allocation6 + $0x3f4] ss:$20 sps:$4 sm:$0xff]  }
 0x310   :  { %v6016_v13 = vpack.c.bf16 %v2938_v45, %v2934_v46  ;;  %v6018_v58 = vpack.c.bf16 %v2940_v12, %v2936_v51  ;;  %v5520_v54 = vld [vmem:[#allocation6 + $0x3f0] ss:$20 sps:$4 sm:$0xff]   ;;  %v5525_v55 = vld [vmem:[#allocation6 + $0x414] ss:$20 sps:$4 sm:$0xff]   ;;  %v5526_v63 = vld [vmem:[#allocation6 + $0x418] ss:$20 sps:$4 sm:$0xff]  }
 0x311   :  { %v6020_v14 = vpack.c.bf16 %v2939_v62, %v2935_v61  ;;  %v6022_v15 = vpack.c.bf16 %v2941_v31, %v2937_v53  ;;  %v5528_v59 = vld [vmem:[#allocation6 + $0x41c] ss:$20 sps:$4 sm:$0xff]   ;;  %v5534_v9 = vld [vmem:[#allocation6 + $0x444] ss:$20 sps:$4 sm:$0xff]   ;;  %v5532_v11 = vld [vmem:[#allocation6 + $0x440] ss:$20 sps:$4 sm:$0xff]  }
 0x312   :  { %v5523_v60 = vld [vmem:[#allocation6 + $0x410] ss:$20 sps:$4 sm:$0xff]   ;;  %v5529_v41 = vld [vmem:[#allocation6 + $0x438] ss:$20 sps:$4 sm:$0xff]   ;;  %v5535_v51 = vld [vmem:[#allocation6 + $0x460] ss:$20 sps:$4 sm:$0xff]  }
 0x313   :  { %4029 = vmatprep.mubr.bf16.mxu0 %v6020_v14  ;;  %4115 = vmatprep.mubr.bf16.mxu1 %v6020_v14  ;;  %v5531_v36 = vld [vmem:[#allocation6 + $0x43c] ss:$20 sps:$4 sm:$0xff]   ;;  %v5537_v47 = vld [vmem:[#allocation6 + $0x464] ss:$20 sps:$4 sm:$0xff]   ;;  %v5540_v46 = vld [vmem:[#allocation6 + $0x46c] ss:$20 sps:$4 sm:$0xff]  }
 0x314   :  { %4030 = vmatmul.mubr.bf16.vlgmr.msra.gmra.mrb[8].mxu0 %v6016_v13  ;;  %4116 = vmatmul.mubr.bf16.vlgmr.msra.gmra.mrb[8].mxu1 %v6016_v13  ;;  %v5538_v45 = vld [vmem:[#allocation6 + $0x468] ss:$20 sps:$4 sm:$0xff]   ;;  %v5543_v12 = vld [vmem:[#allocation6 + $0x48c] ss:$20 sps:$4 sm:$0xff]   ;;  %v5544_v62 = vld [vmem:[#allocation6 + $0x490] ss:$20 sps:$4 sm:$0xff]  }
 0x315   :  { %4041 = vmatpush1.bf16.msra.mxu0 %v5463_v3  ;;  %4127 = vmatpush1.bf16.msra.mxu1 %v5466_v6  ;;  %v5546_v61 = vld [vmem:[#allocation6 + $0x494] ss:$20 sps:$4 sm:$0xff]   ;;  %v5552_v3 = vld [vmem:[#allocation6 + $0x4bc] ss:$20 sps:$4 sm:$0xff]  }
 0x316   :  { %4072 = vmatprep.mubr.bf16.mxu0 %v6022_v15  ;;  %4158 = vmatprep.mubr.bf16.mxu1 %v6022_v15  ;;  %v5541_v53 = vld [vmem:[#allocation6 + $0x488] ss:$20 sps:$4 sm:$0xff]   ;;  %v5547_v6 = vld [vmem:[#allocation6 + $0x4b0] ss:$20 sps:$4 sm:$0xff]  }
 0x317   :  { %4042 = vmatprep.subr.bf16.mxu0 %v5471_v17  ;;  %4128 = vmatprep.subr.bf16.mxu1 %v5474_v18  ;;  %v5549_v31 = vld [vmem:[#allocation6 + $0x4b4] ss:$20 sps:$4 sm:$0xff]   ;;  %v5550_v17 = vld [vmem:[#allocation6 + $0x4b8] ss:$20 sps:$4 sm:$0xff]   ;;  %v5555_v18 = vld [vmem:[#allocation6 + $0x4dc] ss:$20 sps:$4 sm:$0xff]  }
 0x319   :  { %4043 = vmatpush1.bf16.msra.mxu0 %v5469_v8  ;;  %4129 = vmatpush1.bf16.msra.mxu1 %v5472_v19  ;;  %v5558_v8 = vld [vmem:[#allocation6 + $0x4e4] ss:$20 sps:$4 sm:$0xff]  }
 0x31a   :  { %4044 = vmatprep.subr.bf16.mxu0 %v5477_v42  ;;  %4130 = vmatprep.subr.bf16.mxu1 %v5480_v21  ;;  %v5553_v19 = vld [vmem:[#allocation6 + $0x4d8] ss:$20 sps:$4 sm:$0xff]   ;;  %v5556_v42 = vld [vmem:[#allocation6 + $0x4e0] ss:$20 sps:$4 sm:$0xff]   ;;  %v5559_v21 = vld [vmem:[#allocation6 + $0x150] ss:$20 sps:$4 sm:$0xff]  }
 0x31d   :  { %4045 = vmatpush1.bf16.msra.mxu0 %v5475_v22  ;;  %4131 = vmatpush1.bf16.msra.mxu1 %v5478_v23  ;;  %v5560_v22 = vld [vmem:[#allocation6 + $0x3d0] ss:$20 sps:$4 sm:$0xff]  }
 0x31e   :  { %4046 = vmatprep.subr.bf16.mxu0 %v5483_v10  ;;  %4132 = vmatprep.subr.bf16.mxu1 %v5486_v24  ;;  %v5561_v23 = vld [vmem:[#allocation6 + $0x10] ss:$20 sps:$4 sm:$0xff]   ;;  %v5563_v24 = vld [vmem:[#allocation6 + $0x178] ss:$20 sps:$4 sm:$0xff]  }
 0x31f   :  { %v5562_v10 = vld [vmem:[#allocation6 + $0x290] ss:$20 sps:$4 sm:$0xff]  }
 0x321   :  { %4047 = vmatpush1.bf16.msra.mxu0 %v5481_v25  ;;  %4133 = vmatpush1.bf16.msra.mxu1 %v5484_v43  ;;  %v5564_v25 = vld [vmem:[#allocation6 + $0x3f8] ss:$20 sps:$4 sm:$0xff]  }
 0x322   :  { %4048 = vmatprep.subr.bf16.mxu0 %v5489_v26  ;;  %4134 = vmatprep.subr.bf16.mxu1 %v5492_v20  ;;  %v5565_v43 = vld [vmem:[#allocation6 + $0x38] ss:$20 sps:$4 sm:$0xff]   ;;  %v5567_v20 = vld [vmem:[#allocation6 + $0x1a0] ss:$20 sps:$4 sm:$0xff]  }
 0x323   :  { %v5566_v26 = vld [vmem:[#allocation6 + $0x2b8] ss:$20 sps:$4 sm:$0xff]  }
 0x325   :  { %4049 = vmatpush1.bf16.msra.mxu0 %v5487_v28  ;;  %4135 = vmatpush1.bf16.msra.mxu1 %v5490_v29  ;;  %v5568_v28 = vld [vmem:[#allocation6 + $0x420] ss:$20 sps:$4 sm:$0xff]  }
 0x326   :  { %4050 = vmatprep.subr.bf16.mxu0 %v5495_v30  ;;  %4136 = vmatprep.subr.bf16.mxu1 %v5498_v32  ;;  %v5569_v29 = vld [vmem:[#allocation6 + $0x60] ss:$20 sps:$4 sm:$0xff]   ;;  %v5571_v32 = vld [vmem:[#allocation6 + $0x1c8] ss:$20 sps:$4 sm:$0xff]  }
 0x327   :  { %v5570_v30 = vld [vmem:[#allocation6 + $0x2e0] ss:$20 sps:$4 sm:$0xff]  }
 0x329   :  { %4051 = vmatpush1.bf16.msra.mxu0 %v5493_v33  ;;  %4137 = vmatpush1.bf16.msra.mxu1 %v5496_v34  ;;  %v5572_v33 = vld [vmem:[#allocation6 + $0x448] ss:$20 sps:$4 sm:$0xff]  }
 0x32a   :  { %4052 = vmatprep.subr.bf16.mxu0 %v5501_v35  ;;  %4138 = vmatprep.subr.bf16.mxu1 %v5504_v1  ;;  %v5573_v34 = vld [vmem:[#allocation6 + $0x88] ss:$20 sps:$4 sm:$0xff]   ;;  %v5575_v35 = vld [vmem:[#allocation6 + $0x1f0] ss:$20 sps:$4 sm:$0xff]  }
 0x32b   :  { %v5577_v1 = vld [vmem:[#allocation6 + $0xb0] ss:$20 sps:$4 sm:$0xff]  }
 0x32d   :  { %4053 = vmatpush1.bf16.msra.mxu0 %v5499_v37  ;;  %4139 = vmatpush1.bf16.msra.mxu1 %v5502_v38  ;;  %v5578_v37 = vld [vmem:[#allocation6 + $0x330] ss:$20 sps:$4 sm:$0xff]   ;;  %v5579_v38 = vld [vmem:[#allocation6 + $0x218] ss:$20 sps:$4 sm:$0xff]  }
 0x32e   :  { %4054 = vmatprep.subr.bf16.mxu0 %v5507_v39  ;;  %4140 = vmatprep.subr.bf16.mxu1 %v5510_v40  ;;  %v5580_v39 = vld [vmem:[#allocation6 + $0x498] ss:$20 sps:$4 sm:$0xff]  }
 0x32f   :  { %v5581_v40 = vld [vmem:[#allocation6 + $0xd8] ss:$20 sps:$4 sm:$0xff]  }
 0x331   :  { %4055 = vmatpush1.bf16.msra.mxu0 %v5505_v56  ;;  %4141 = vmatpush1.bf16.msra.mxu1 %v5508_v57  ;;  %v5582_v56 = vld [vmem:[#allocation6 + $0x358] ss:$20 sps:$4 sm:$0xff]   ;;  %v5583_v57 = vld [vmem:[#allocation6 + $0x240] ss:$20 sps:$4 sm:$0xff]  }
 0x332   :  { %4056 = vmatprep.subr.bf16.mxu0 %v5513_v44  ;;  %4142 = vmatprep.subr.bf16.mxu1 %v5516_v48  ;;  %v5584_v44 = vld [vmem:[#allocation6 + $0x4c0] ss:$20 sps:$4 sm:$0xff]  }
 0x333   :  { %v5585_v48 = vld [vmem:[#allocation6 + $0x100] ss:$20 sps:$4 sm:$0xff]  }
 0x335   :  { %4057 = vmatpush1.bf16.msra.mxu0 %v5511_v27  ;;  %4143 = vmatpush1.bf16.msra.mxu1 %v5514_v49  ;;  %v5586_v27 = vld [vmem:[#allocation6 + $0x380] ss:$20 sps:$4 sm:$0xff]   ;;  %v5587_v49 = vld [vmem:[#allocation6 + $0x268] ss:$20 sps:$4 sm:$0xff]  }
 0x336   :  { %4058 = vmatprep.subr.bf16.mxu0 %v5519_v16  ;;  %4144 = vmatprep.subr.bf16.mxu1 %v5522_v50  ;;  %v5588_v16 = vld [vmem:[#allocation6 + $0x4e8] ss:$20 sps:$4 sm:$0xff]  }
 0x337   :  { %v5589_v50 = vld [vmem:[#allocation6 + $0x128] ss:$20 sps:$4 sm:$0xff]  }
 0x339   :  { %4059 = vmatpush1.bf16.msra.mxu0 %v5517_v52  ;;  %4145 = vmatpush1.bf16.msra.mxu1 %v5520_v54  ;;  %v5590_v52 = vld [vmem:[#allocation6 + $0x3a8] ss:$20 sps:$4 sm:$0xff]   ;;  %v3138_v54 = vld [vmem:[%s6081_s7] sm:$0x1f] }
 0x33a   :  { %4060 = vmatprep.subr.bf16.mxu0 %v5525_v55  ;;  %4146 = vmatprep.subr.bf16.mxu1 %v5528_v59  ;;  %v3143_v55 = vrot.slane %v3138_v54, %v5987_v2  ;;  %v3151_v59 = vrot.slane %v3138_v54, %v5990_v4 }
 0x33d   :  { %4061 = vmatpush1.bf16.msra.mxu0 %v5523_v60  ;;  %4147 = vmatpush1.bf16.msra.mxu1 %v5526_v63  ;;  %v3147_v60 = vrot.slane %v3138_v54, %v5996_v5  ;;  %v3155_v63 = vrot.slane %v3138_v54, %v5999_v7 }
 0x33e   :  { %4062 = vmatprep.subr.bf16.mxu0 %v5531_v36  ;;  %4148 = vmatprep.subr.bf16.mxu1 %v5534_v9 }
 0x341   :  { %4063 = vmatpush1.bf16.msra.mxu0 %v5529_v41  ;;  %4149 = vmatpush1.bf16.msra.mxu1 %v5532_v11 }
 0x342   :  { %4064 = vmatprep.subr.bf16.mxu0 %v5537_v47  ;;  %4150 = vmatprep.subr.bf16.mxu1 %v5540_v46 }
 0x345   :  { %4065 = vmatpush1.bf16.msra.mxu0 %v5535_v51  ;;  %4151 = vmatpush1.bf16.msra.mxu1 %v5538_v45 }
 0x346   :  { %4066 = vmatprep.subr.bf16.mxu0 %v5543_v12  ;;  %4152 = vmatprep.subr.bf16.mxu1 %v5546_v61 }
 0x349   :  { %4067 = vmatpush1.bf16.msra.mxu0 %v5541_v53  ;;  %4153 = vmatpush1.bf16.msra.mxu1 %v5544_v62  ;;  %v3158_v53 = vsub.s32 4, %v5984_v0 }
 0x34a   :  { %4068 = vmatprep.subr.bf16.mxu0 %v5549_v31  ;;  %4154 = vmatprep.subr.bf16.mxu1 %v5552_v3 }
 0x34b   :  { %v3159_v31 = vrot.slane %v3138_v54, %v3158_v53 }
 0x34d   :  { %4069 = vmatpush1.bf16.msra.mxu0 %v5547_v6  ;;  %4155 = vmatpush1.bf16.msra.mxu1 %v5550_v17 }
 0x34e   :  { %4070 = vmatprep.subr.bf16.mxu0 %v5555_v18  ;;  %4156 = vmatprep.subr.bf16.mxu1 %v5558_v8 }
 0x351   :  { %4071 = vmatpush1.bf16.msra.mxu0 %v5553_v19  ;;  %4157 = vmatpush1.bf16.msra.mxu1 %v5556_v42 }
 0x352   :  { %4764 = vmatprep.subr.bf16.mxu0 %v5559_v21  ;;  %4786 = vmatprep.subr.bf16.mxu1 %v5560_v22 }
 0x354   :  { %4073 = vmatmul.mubr.bf16.vlgmr.msra.gmra.mrb[8].mxu0 %v6018_v58  ;;  %4159 = vmatmul.mubr.bf16.vlgmr.msra.gmra.mrb[8].mxu1 %v6018_v58 }
 0x355   :  { %4765 = vmatpush3.bf16.msra.mxu0 %v5561_v23  ;;  %4201 = vmatprep.mubr.bf16.mxu0 %v6020_v14  ;;  %v5574_v14 = vld [vmem:[#allocation6 + $0x308] ss:$20 sps:$4 sm:$0xff]  }
 0x356   :  { %4787 = vmatpush3.bf16.msra.mxu1 %v5562_v10  ;;  %4242 = vmatprep.mubr.bf16.mxu1 %v6022_v15  ;;  %v5576_v15 = vld [vmem:[#allocation6 + $0x470] ss:$20 sps:$4 sm:$0xff]  }
 0x357   :  { %4766 = vmatprep.subr.bf16.mxu0 %v5563_v24  ;;  %4788 = vmatprep.subr.bf16.mxu1 %v5564_v25 }
 0x359   :  { %4767 = vmatpush3.bf16.msra.mxu0 %v5565_v43 }
 0x35a   :  { %4789 = vmatpush3.bf16.msra.mxu1 %v5566_v26  ;;  %4768 = vmatprep.subr.bf16.mxu0 %v5567_v20 }
 0x35b   :  { %4790 = vmatprep.subr.bf16.mxu1 %v5568_v28 }
 0x35d   :  { %4769 = vmatpush3.bf16.msra.mxu0 %v5569_v29 }
 0x35e   :  { %4791 = vmatpush3.bf16.msra.mxu1 %v5570_v30  ;;  %4770 = vmatprep.subr.bf16.mxu0 %v5571_v32 }
 0x35f   :  { %4792 = vmatprep.subr.bf16.mxu1 %v5572_v33 }
 0x361   :  { %4771 = vmatpush3.bf16.msra.mxu0 %v5573_v34 }
 0x362   :  { %4793 = vmatpush3.bf16.msra.mxu1 %v5574_v14  ;;  %4772 = vmatprep.subr.bf16.mxu0 %v5575_v35 }
 0x363   :  { %4794 = vmatprep.subr.bf16.mxu1 %v5576_v15 }
 0x365   :  { %4773 = vmatpush3.bf16.msra.mxu0 %v5577_v1 }
 0x366   :  { %4795 = vmatpush3.bf16.msra.mxu1 %v5578_v37  ;;  %4774 = vmatprep.subr.bf16.mxu0 %v5579_v38 }
 0x367   :  { %4796 = vmatprep.subr.bf16.mxu1 %v5580_v39 }
 0x369   :  { %4775 = vmatpush3.bf16.msra.mxu0 %v5581_v40 }
 0x36a   :  { %4797 = vmatpush3.bf16.msra.mxu1 %v5582_v56  ;;  %4776 = vmatprep.subr.bf16.mxu0 %v5583_v57 }
 0x36b   :  { %4798 = vmatprep.subr.bf16.mxu1 %v5584_v44 }
 0x36d   :  { %4777 = vmatpush3.bf16.msra.mxu0 %v5585_v48 }
 0x36e   :  { %4799 = vmatpush3.bf16.msra.mxu1 %v5586_v27  ;;  %4778 = vmatprep.subr.bf16.mxu0 %v5587_v49 }
 0x36f   :  { %4800 = vmatprep.subr.bf16.mxu1 %v5588_v16 }
 0x371   :  { %4779 = vmatpush3.bf16.msra.mxu0 %v5589_v50 }
 0x372   :  { %4801 = vmatpush3.bf16.msra.mxu1 %v5590_v52 }
 0x374   :  { %4202 = vmatmul.mubr.bf16.vlgmr.msra.gmra.mrb[12].mxu0 %v6016_v13 }
 0x375   :  { %4243 = vmatmul.mubr.bf16.vlgmr.msra.gmra.mrb[12].mxu1 %v6018_v58 }
 0x427   :  { %v4074_v36 = vpop.f32.mrb[8].mxu0  ;;  %v4160_v9 = vpop.f32.mrb[8].mxu1 }
 0x428   :  { %v4824_v41 = vadd.f32 %v4074_v36, %v3143_v55  ;;  %v4828_v11 = vadd.f32 %v4160_v9, %v3151_v59  ;;  %v4076_v47 = vpop.f32.mrb[9].mxu0  ;;  %v4162_v13 = vpop.f32.mrb[9].mxu1 }
 0x429   :  { %v4825_v46 = vadd.f32 %v4076_v47, %v3147_v60  ;;  %v4829_v58 = vadd.f32 %v4162_v13, %v3155_v63  ;;  %v4078_v51 = vpop.f32.mrb[10].mxu0  ;;  %v4164_v45 = vpop.f32.mrb[10].mxu1 }
 0x42a   :  { %4251 = vst [vmem:[%s6082_s8] sm:$0xff] %v4824_v41  ;;  %4253 = vst [vmem:[%s6082_s8 + $0x10] sm:$0xff] %v4828_v11  ;;  %v4826_v2 = vadd.f32 %v4078_v51, %v3143_v55  ;;  %v4830_v4 = vadd.f32 %v4164_v45, %v3151_v59  ;;  %v4080_v5 = vpop.f32.mrb[11].mxu0  ;;  %v4166_v7 = vpop.f32.mrb[11].mxu1 }
 0x42b   :  { %4252 = vst [vmem:[%s6082_s8 + $0x8] sm:$0xff] %v4825_v46  ;;  %4254 = vst [vmem:[%s6082_s8 + $0x18] sm:$0xff] %v4829_v58  ;;  %v4827_v12 = vadd.f32 %v4080_v5, %v3147_v60  ;;  %v4831_v61 = vadd.f32 %v4166_v7, %v3155_v63 }
 0x42c   :  { %4256 = vst [vmem:[%s6082_s8 + $0x28] sm:$0xff] %v4826_v2  ;;  %4258 = vst [vmem:[%s6082_s8 + $0x38] sm:$0xff] %v4830_v4 }
 0x42d   :  { %4257 = vst [vmem:[%s6082_s8 + $0x30] sm:$0xff] %v4827_v12  ;;  %4259 = vst [vmem:[%s6082_s8 + $0x40] sm:$0xff] %v4831_v61 }
 0x447   :  { %v4780_v62 = vpop.f32.mrb[12].mxu0 }
 0x448   :  { %v4802_v3 = vpop.f32.mrb[12].mxu1  ;;  %v4781_v6 = vpop.f32.mrb[13].mxu0 }
 0x449   :  { %v4782_v17 = vadd.f32 %v4781_v6, %v4780_v62  ;;  %v4803_v18 = vpop.f32.mrb[13].mxu1  ;;  %v4783_v8 = vpop.f32.mrb[14].mxu0 }
 0x44a   :  { %v4804_v19 = vadd.f32 %v4803_v18, %v4802_v3  ;;  %v4805_v42 = vpop.f32.mrb[14].mxu1  ;;  %v4784_v21 = vpop.f32.mrb[15].mxu0 }
 0x44b   :  { %v4204_v22 = vadd.f32 %v4782_v17, %v3159_v31  ;;  %v4785_v23 = vadd.f32 %v4784_v21, %v4783_v8  ;;  %v4806_v10 = vpop.f32.mrb[15].mxu1 }
 0x44c   :  { %v4807_v24 = vadd.f32 %v4806_v10, %v4805_v42 }
 0x44d   :  { %v4245_v25 = vadd.f32 %v4804_v19, %v4204_v22  ;;  %v4207_v43 = vadd.f32 %v4785_v23, %v3159_v31 }
 0x44f   :  { %4255 = vst [vmem:[%s6082_s8 + $0x20] sm:$0xff] %v4245_v25  ;;  %v4248_v0 = vadd.f32 %v4807_v24, %v4207_v43 }
 0x451   :  { %4260 = vst [vmem:[%s6082_s8 + $0x48] sm:$0xff] %v4248_v0 }
 0x452   :  { %4265 = vsyncpa [#allocation3], 1 }
 0x453   :  { %4266 = vsyncpa [#allocation5], 1 }

</bundles_post_ra>
